<compile_context>
chip_gen: v7x
topology: tpu7x:2x2x1
jax: 0.10.0
libtpu: 0.0.40
codegen_flags: <defaults>
</compile_context>

<pallas_src>
import jax
import jax.numpy as jnp
from jax import lax
from jax.experimental import pallas as pl
from jax.experimental.pallas import tpu as pltpu

EPS = 1e-5


def _round_up(n, m):
    return ((n + m - 1) // m) * m


def prenorm_linear_kernel(x_ref, gamma_ref, beta_ref, w_ref, bias_ref,
                          o_ref, y_ref):
    """Grid = (row tiles, N tiles).

    x_ref:     (tm, D)   rows of x
    gamma_ref: (1, D)    f32
    beta_ref:  (1, D)    f32
    w_ref:     (D, tn)   fn weight column tile (native dtype)
    bias_ref:  (1, tn)   f32
    o_ref:     (tm, tn)  output tile
    y_ref:     (tm, D)   VMEM scratch holding LayerNorm(x) in matmul dtype
    """
    j = pl.program_id(1)

    # LayerNorm once per row tile (N axis is the inner, "arbitrary" axis, so
    # the scratch written at j == 0 is reused for all subsequent N tiles).
    @pl.when(j == 0)
    def _():
        x = x_ref[...].astype(jnp.float32)
        mean = jnp.mean(x, axis=-1, keepdims=True)
        xc = x - mean
        var = jnp.mean(xc * xc, axis=-1, keepdims=True)   # biased, like nn.LayerNorm
        inv = lax.rsqrt(var + EPS)
        y = xc * inv * gamma_ref[...] + beta_ref[...]
        y_ref[...] = y.astype(y_ref.dtype)

    # fn: Linear(dim -> hidden) on the MXU.  Native-dtype operands
    # (bf16 x bf16 when inputs are bf16), f32 accumulation.
    out = jnp.dot(y_ref[...], w_ref[...], preferred_element_type=jnp.float32)
    out = out + bias_ref[...]
    o_ref[...] = out.astype(o_ref.dtype)


def prenorm_linear(x, gamma, beta, w, bias, *, tm=256, tn=256):
    """x: (B, S, D) -> (B, S, H), H = w.shape[1].

    Handles arbitrary B*S (rows padded to a multiple of tm) and arbitrary H
    (padded to a multiple of 128 / tn for lane-dense output stores).
    """
    B, S, D = x.shape
    H = w.shape[1]
    R = B * S
    out_dtype = x.dtype

    # Row tile: as large as possible (<= tm), multiple of 8 sublanes.
    tm = max(8, min(tm, _round_up(R, 8)))
    R_pad = _round_up(R, tm)

    # N tile: lane-dense, multiple of 128.
    tn = max(128, min(tn, _round_up(H, 128)))
    H_pad = _round_up(H, tn)

    x2 = x.reshape(R, D)
    if R_pad != R:
        x2 = jnp.pad(x2, ((0, R_pad - R), (0, 0)))

    w_p, bias_p = w, bias
    if H_pad != H:
        w_p = jnp.pad(w, ((0, 0), (0, H_pad - H)))
        bias_p = jnp.pad(bias, ((0, H_pad - H),))

    # Pre-cast small params to f32 once (no per-step recompute in the kernel).
    gamma2 = gamma.reshape(1, D).astype(jnp.float32)
    beta2 = beta.reshape(1, D).astype(jnp.float32)
    bias2 = bias_p.reshape(1, H_pad).astype(jnp.float32)

    grid = (R_pad // tm, H_pad // tn)

    out2 = pl.pallas_call(
        prenorm_linear_kernel,
        out_shape=jax.ShapeDtypeStruct((R_pad, H_pad), out_dtype),
        grid_spec=pltpu.PrefetchScalarGridSpec(
            num_scalar_prefetch=0,
            grid=grid,
            in_specs=[
                pl.BlockSpec((tm, D), lambda i, j: (i, 0)),   # x rows
                pl.BlockSpec((1, D), lambda i, j: (0, 0)),    # gamma (f32)
                pl.BlockSpec((1, D), lambda i, j: (0, 0)),    # beta  (f32)
                pl.BlockSpec((D, tn), lambda i, j: (0, j)),   # weight N tile
                pl.BlockSpec((1, tn), lambda i, j: (0, j)),   # bias   N tile
            ],
            out_specs=pl.BlockSpec((tm, tn), lambda i, j: (i, j)),
            scratch_shapes=[pltpu.VMEM((tm, D), w.dtype)],    # LN(x) in matmul dtype
        ),
        compiler_params=pltpu.CompilerParams(
            dimension_semantics=("parallel", "arbitrary"),
            vmem_limit_bytes=32 * 1024 * 1024,
        ),
    )(x2, gamma2, beta2, w_p, bias2)

    if R_pad != R or H_pad != H:
        out2 = out2[:R, :H]
    return out2.reshape(B, S, H)


def prenorm_linear_ref(x, gamma, beta, w, bias):
    xf = x.astype(jnp.float32)
    mean = jnp.mean(xf, axis=-1, keepdims=True)
    xc = xf - mean
    var = jnp.mean(xc * xc, axis=-1, keepdims=True)
    y = xc / jnp.sqrt(var + EPS) * gamma.astype(jnp.float32) + beta.astype(jnp.float32)
    out = y @ w.astype(jnp.float32) + bias.astype(jnp.float32)
    return out.astype(x.dtype)


if __name__ == "__main__":
    key = jax.random.PRNGKey(0)
    k_x, k_g, k_b, k_w, k_bias = jax.random.split(key, 5)

    # Small but lane-dense shapes (D, H multiples of 128 avoid masked stores).
    B, S, D, H = 2, 64, 256, 512
    x = jax.random.normal(k_x, (B, S, D), dtype=jnp.float32)

    gamma = 1.0 + 0.1 * jax.random.normal(k_g, (D,), dtype=jnp.float32)
    beta = 0.1 * jax.random.normal(k_b, (D,), dtype=jnp.float32)
    w = jax.random.normal(k_w, (D, H), dtype=jnp.float32) / jnp.sqrt(D)
    bias = 0.1 * jax.random.normal(k_bias, (H,), dtype=jnp.float32)

    # f32 path (strict check).
    out = jax.block_until_ready(prenorm_linear(x, gamma, beta, w, bias))
    ref = prenorm_linear_ref(x, gamma, beta, w, bias)
    assert out.shape == (B, S, H)
    assert jnp.allclose(out, ref, atol=1e-4, rtol=1e-4)

    # bf16 path (native bf16 MXU matmul, f32 accumulation; looser tolerance).
    xb, gb, bb = x.astype(jnp.bfloat16), gamma.astype(jnp.bfloat16), beta.astype(jnp.bfloat16)
    wb, biasb = w.astype(jnp.bfloat16), bias.astype(jnp.bfloat16)
    out_b = jax.block_until_ready(prenorm_linear(xb, gb, bb, wb, biasb))
    ref_b = prenorm_linear_ref(xb, gb, bb, wb, biasb)
    assert out_b.dtype == jnp.bfloat16
    assert jnp.allclose(out_b.astype(jnp.float32), ref_b.astype(jnp.float32),
                        atol=1e-1, rtol=5e-2)

    print("KERNEL_OK")
</pallas_src>

<mosaic_0001>
module attributes {stable_mosaic.version = 11 : i64} {
  func.func @prenorm_linear_kernel(%arg0: i32, %arg1: i32, %arg2: memref<128x256xf32, #tpu.memory_space<vmem>>, %arg3: memref<1x256xf32, #tpu.memory_space<vmem>>, %arg4: memref<1x256xf32, #tpu.memory_space<vmem>>, %arg5: memref<256x256xf32, #tpu.memory_space<vmem>>, %arg6: memref<1x256xf32, #tpu.memory_space<vmem>>, %arg7: memref<128x256xf32, #tpu.memory_space<vmem>>, %arg8: memref<128x256xf32, #tpu.memory_space<vmem>>) attributes {dimension_semantics = [#tpu.dimension_semantics<parallel>, #tpu.dimension_semantics<arbitrary>], iteration_bounds = array<i64: 1, 2>, scalar_prefetch = 0 : i64, scratch_operands = 1 : i64, tpu.core_type = #tpu.core_type<tc>, window_params = [{transform_indices = @transform_0, window_bounds = array<i64: 128, 256>}, {pipeline_mode = #tpu.pipeline_mode<synchronous>, transform_indices = @transform_1, window_bounds = array<i64: 1, 256>}, {pipeline_mode = #tpu.pipeline_mode<synchronous>, transform_indices = @transform_2, window_bounds = array<i64: 1, 256>}, {transform_indices = @transform_3, window_bounds = array<i64: 256, 256>}, {transform_indices = @transform_4, window_bounds = array<i64: 1, 256>}, {transform_indices = @transform_5, window_bounds = array<i64: 128, 256>}]} {
    %c0_i32 = arith.constant 0 : i32
    %0 = arith.cmpi eq, %arg1, %c0_i32 : i32
    %1 = arith.extui %0 : i1 to i32
    %c0_i32_0 = arith.constant 0 : i32
    %2 = arith.cmpi ne, %1, %c0_i32_0 : i32
    scf.if %2 {
      %c0_8 = arith.constant 0 : index
      %c0_9 = arith.constant 0 : index
      %10 = vector.load %arg2[%c0_8, %c0_9] : memref<128x256xf32, #tpu.memory_space<vmem>>, vector<128x256xf32>
      %cst_10 = arith.constant dense<0.000000e+00> : vector<128xf32>
      %11 = vector.multi_reduction <add>, %10, %cst_10 [1] : vector<128x256xf32> to vector<128xf32>
      %12 = vector.shape_cast %11 : vector<128xf32> to vector<128x1xf32>
      %cst_11 = arith.constant 2.560000e+02 : f32
      %13 = vector.broadcast %cst_11 : f32 to vector<128x1xf32>
      %14 = arith.divf %12, %13 : vector<128x1xf32>
      %15 = vector.broadcast %14 : vector<128x1xf32> to vector<128x256xf32>
      %16 = arith.subf %10, %15 : vector<128x256xf32>
      %17 = arith.mulf %16, %16 : vector<128x256xf32>
      %cst_12 = arith.constant dense<0.000000e+00> : vector<128xf32>
      %18 = vector.multi_reduction <add>, %17, %cst_12 [1] : vector<128x256xf32> to vector<128xf32>
      %19 = vector.shape_cast %18 : vector<128xf32> to vector<128x1xf32>
      %cst_13 = arith.constant 2.560000e+02 : f32
      %20 = vector.broadcast %cst_13 : f32 to vector<128x1xf32>
      %21 = arith.divf %19, %20 : vector<128x1xf32>
      %cst_14 = arith.constant 9.99999974E-6 : f32
      %22 = vector.broadcast %cst_14 : f32 to vector<128x1xf32>
      %23 = arith.addf %21, %22 : vector<128x1xf32>
      %24 = math.rsqrt %23 : vector<128x1xf32>
      %25 = vector.broadcast %24 : vector<128x1xf32> to vector<128x256xf32>
      %26 = arith.mulf %16, %25 : vector<128x256xf32>
      %c0_15 = arith.constant 0 : index
      %c0_16 = arith.constant 0 : index
      %27 = vector.load %arg3[%c0_15, %c0_16] : memref<1x256xf32, #tpu.memory_space<vmem>>, vector<1x256xf32>
      %28 = vector.broadcast %27 : vector<1x256xf32> to vector<128x256xf32>
      %29 = arith.mulf %26, %28 : vector<128x256xf32>
      %c0_17 = arith.constant 0 : index
      %c0_18 = arith.constant 0 : index
      %30 = vector.load %arg4[%c0_17, %c0_18] : memref<1x256xf32, #tpu.memory_space<vmem>>, vector<1x256xf32>
      %31 = vector.broadcast %30 : vector<1x256xf32> to vector<128x256xf32>
      %32 = arith.addf %29, %31 : vector<128x256xf32>
      %c0_19 = arith.constant 0 : index
      %c0_20 = arith.constant 0 : index
      %33 = vector.load %arg8[%c0_19, %c0_20] : memref<128x256xf32, #tpu.memory_space<vmem>>, vector<128x256xf32>
      tpu.vector_store %arg8[%c0_19, %c0_20], %32 {strides = array<i32>} : memref<128x256xf32, #tpu.memory_space<vmem>>, vector<128x256xf32>,
    } else {
    }
    %c0 = arith.constant 0 : index
    %c0_1 = arith.constant 0 : index
    %3 = vector.load %arg8[%c0, %c0_1] : memref<128x256xf32, #tpu.memory_space<vmem>>, vector<128x256xf32>
    %c0_2 = arith.constant 0 : index
    %c0_3 = arith.constant 0 : index
    %4 = vector.load %arg5[%c0_2, %c0_3] : memref<256x256xf32, #tpu.memory_space<vmem>>, vector<256x256xf32>
    %cst = arith.constant dense<0.000000e+00> : vector<128x256xf32>
    %5 = tpu.matmul %3, %4, %cst {dimension_numbers = #tpu.dot_dimension_numbers<[1], [0], [0], [1], [0, 0, 1, 1], [], []>} : vector<128x256xf32>, vector<256x256xf32>, vector<128x256xf32> -> vector<128x256xf32>
    %c0_4 = arith.constant 0 : index
    %c0_5 = arith.constant 0 : index
    %6 = vector.load %arg6[%c0_4, %c0_5] : memref<1x256xf32, #tpu.memory_space<vmem>>, vector<1x256xf32>
    %7 = vector.broadcast %6 : vector<1x256xf32> to vector<128x256xf32>
    %8 = arith.addf %5, %7 : vector<128x256xf32>
    %c0_6 = arith.constant 0 : index
    %c0_7 = arith.constant 0 : index
    %9 = vector.load %arg7[%c0_6, %c0_7] : memref<128x256xf32, #tpu.memory_space<vmem>>, vector<128x256xf32>
    tpu.vector_store %arg7[%c0_6, %c0_7], %8 {strides = array<i32>} : memref<128x256xf32, #tpu.memory_space<vmem>>, vector<128x256xf32>,
    return
  }
  func.func @transform_0(%arg0: i32, %arg1: i32) -> (i32, i32) {
    %c0_i32 = arith.constant 0 : i32
    %c0_i32_0 = arith.constant 0 : i32
    return %arg0, %c0_i32 : i32, i32
  }
  func.func @transform_1(%arg0: i32, %arg1: i32) -> (i32, i32) {
    %c0_i32 = arith.constant 0 : i32
    %c0_i32_0 = arith.constant 0 : i32
    %c0_i32_1 = arith.constant 0 : i32
    return %c0_i32, %c0_i32_0 : i32, i32
  }
  func.func @transform_2(%arg0: i32, %arg1: i32) -> (i32, i32) {
    %c0_i32 = arith.constant 0 : i32
    %c0_i32_0 = arith.constant 0 : i32
    %c0_i32_1 = arith.constant 0 : i32
    return %c0_i32, %c0_i32_0 : i32, i32
  }
  func.func @transform_3(%arg0: i32, %arg1: i32) -> (i32, i32) {
    %c0_i32 = arith.constant 0 : i32
    %c0_i32_0 = arith.constant 0 : i32
    return %c0_i32, %arg1 : i32, i32
  }
  func.func @transform_4(%arg0: i32, %arg1: i32) -> (i32, i32) {
    %c0_i32 = arith.constant 0 : i32
    %c0_i32_0 = arith.constant 0 : i32
    return %c0_i32, %arg1 : i32, i32
  }
  func.func @transform_5(%arg0: i32, %arg1: i32) -> (i32, i32) {
    %c0_i32 = arith.constant 0 : i32
    return %arg0, %arg1 : i32, i32
  }
}

</mosaic_0001>

<bundles_post_ra>
// kernel: tpu_custom_call.1
= control target key start
LH: loop header
LB: loop body
LE: loop exit
PB: predicated region body
PF: predicated region fallthrough
CT: control target
= control target key end

     0   :  { %10 = vsyncpa [#allocation4], 0  ;;  %s2396_s0 = inlined_call_operand.hbm [shape: f32[128,256], index: 0, kind: input, shape index: {}]   ;;  %s2397_s1 = inlined_call_operand.vmem [shape: f32[1,256], index: 1, kind: input, shape index: {}]   ;;  %s2398_s2 = inlined_call_operand.hbm [shape: f32[1,256], index: 2, kind: input, shape index: {}]   ;;  %s2399_s3 = inlined_call_operand.hbm [shape: f32[256,512], index: 3, kind: input, shape index: {}]   ;;  %s2400_s4 = inlined_call_operand.vmem [shape: f32[1,512], index: 4, kind: input, shape index: {}]   ;;  %s2401_s5 = inlined_call_operand.hbm [shape: f32[128,512], index: 5, kind: output, shape index: {}]  }
   0x1   :  { %11 = vsyncpa [#allocation7], 0 }
   0x2   :  { %12 = vsyncpa [#allocation5], 0 }
   0x3   :  { %14 = vsyncpa [#allocation5 + $0x1], 0  ;;  %s1617_s18 = smov 0   ;;  %s1619_s19 = smov 0  }
   0x4   :  { %s1621_s20 = smov 0   ;;  %s1623_s21 = smov 0  }
   0x5   :  { %s1625_s22 = smov 0   ;;  %s1627_s23 = smov 0  }
   0x6 LB: > { %s1648_s24 = sadd.s32 4294967295, %s1575_s23   ;;  %s1160_s25 = sadd.s32 4294967294, %s1575_s23   ;;  %s1575_s23 = sphi %s1627_s23, %s20_s23   ;;  %s1571_s22 = sphi %s1625_s22, %s2432_s22   ;;  %s1567_s21 = sphi %s1623_s21, %s2431_s21   ;;  %s1563_s20 = sphi %s1621_s20, %s2430_s20   ;;  %s1559_s19 = sphi %s1619_s19, %s2429_s19   ;;  %s1555_s18 = sphi %s1617_s18, %s2428_s18  }
   0x7   : > { %p114_p0 = scmp.ne.s32.totalorder %s1563_s20, %s1559_s19  ;;  %p115_p1 = scmp.eq.s32.totalorder %s1575_s23, 0 }
   0x8   : > { %p120_p2 = scmp.ne.s32.totalorder %s1559_s19, %s1555_s18  ;;  %p2402_p3 = scmp.eq.s32.totalorder %s1648_s24, 0 }
   0x9   : > { %p172_p4 = scmp.eq.s32.totalorder %s1648_s24, 1  ;;  %p1659_p5 = por %p115_p1, %p114_p0 }
   0xa   : > { %p178_p6 = scmp.eq.s32.totalorder %s1160_s25, 1  ;;  %p1665_p7 = por %p2402_p3, %p120_p2 }
   0xb   : > { %p1669_p8 = por %p172_p4, %p114_p0  ;;  %p1161_p10 = scmp.ge.s32.totalorder %s1575_s23, 1 }
   0xc   : > { %s2409_s28 = scalar_select %p1665_p7, 1, 0 }
   0xd   : > { %s2410_s29 = scalar_select %p1669_p8, 1, 0 }
   0xe   : > { %p1673_p9 = por %p178_p6, %p120_p2  ;;  %p185_p11 = scmp.lt.s32.totalorder %s1575_s23, 3 }
   0xf   : > { %s1577_s7 = smov [#allocation3]   ;;  %p1307_p1 = scmp.lt.s32.totalorder %s1575_s23, 2 }
  0x10   : > { %s2411_s30 = scalar_select %p1673_p9, 1, 0 }
  0x11   : > { %p1679_p12 = pnand %p1161_p10, %p185_p11  ;;  %s201_s8 = sshll.u32 %s1577_s7, 4  ;;  %s1683_s8 = int_to_ptr.vmem [resolvable:$true] %s201_s8 }
  0x12   : > { %2412 = sst [smem:[#allocation14_spill]] %s2411_s30  ;;  %s1578_s10 = smov [#allocation6]  }
  0x13   : > { %p1290_p13 = pneg %p1679_p12  ;;  %s218_s11 = sshll.u32 %s1578_s10, 4  ;;  %s1701_s11 = int_to_ptr.vmem [resolvable:$true] %s218_s11 }
  0x14   : > { %p1697_p4 = pnand %p1307_p1, %p1659_p5  ;;  %s1399_s15 = scalar_lea.hbm %s2396_s0, 4096 }
  0x15   : > { %p1691_p2 = pnand %p1290_p13, %p2402_p3  ;;  %p1400_p6 = scmp.ne.s32.totalorder %s2396_s0, %s1399_s15 }
  0x16   : > { %p1406_p5 = scmp.lt.u32.totalorder %s1399_s15, %s2396_s0 }
  0x17   : > { %p1401_p10 = pneg %p1691_p2 }
  0x19   : > { %p1402_p11 = pnand %p1401_p10, %p1400_p6 }
  0x1b   : > { %p1403_p13 = pneg %p1402_p11 }
  0x1d   : > { %p1408_p1 = pnand %p1406_p5, %p1403_p13 }
  0x1f   : > { %1411 = shalt.err (!%p1408_p1)
}
  0x20   : > { %s1412_s7 = scalar_lea.vmem %s1683_s8, 4096  ;;  %p1420_p8 = scmp.lt.s32.totalorder %s1683_s8, %s1683_s8 }
  0x21   : > { %p1413_p0 = scmp.ne.s32.totalorder %s1683_s8, %s1412_s7  ;;  %p1421_p6 = scmp.lt.s32.totalorder %s1412_s7, %s1412_s7 }
  0x23   : > { %p1415_p3 = pnand %p1413_p0, %p1401_p10  ;;  %p1422_p11 = por %p1421_p6, %p1420_p8 }
  0x25   : > { %p1416_p9 = pneg %p1415_p3 }
  0x27   : > { %p1423_p7 = pnand %p1422_p11, %p1416_p9 }
  0x29   : > { %1426 = shalt.err (!%p1423_p7)
}
  0x2a   : > { %s2406_s10 = smov 256   ;;  %s2407_s13 = smov 16  }
  0x2b   : > { %1293 = dma.hbm_to_vmem [thread:$0]  (!%p1691_p2), %s2396_s0, 4096, %s1683_s8, [#allocation4], %s2406_s10, %s2406_s10, %s2407_s13  }
  0x2c   : > { %s1427_s25 = scalar_lea.hbm %s2398_s2, 32 }
  0x2d   : > { %p1428_p3 = scmp.ne.s32.totalorder %s2398_s2, %s1427_s25  ;;  %p1434_p9 = scmp.lt.u32.totalorder %s1427_s25, %s2398_s2 }
  0x2f   : > { %p1430_p7 = pnand %p1428_p3, %p1401_p10 }
  0x31   : > { %p1431_p8 = pneg %p1430_p7 }
  0x33   : > { %p1436_p0 = pnand %p1434_p9, %p1431_p8 }
  0x35   : > { %1439 = shalt.err (!%p1436_p0)
}
  0x36   : > { %s1440_s8 = scalar_lea.vmem %s1701_s11, 32  ;;  %p1448_p6 = scmp.lt.s32.totalorder %s1701_s11, %s1701_s11 }
  0x37   : > { %p1441_p13 = scmp.ne.s32.totalorder %s1701_s11, %s1440_s8  ;;  %p1449_p11 = scmp.lt.s32.totalorder %s1440_s8, %s1440_s8 }
  0x39   : > { %p1443_p5 = pnand %p1441_p13, %p1401_p10  ;;  %p1450_p3 = por %p1449_p11, %p1448_p6 }
  0x3b   : > { %p1444_p1 = pneg %p1443_p5 }
  0x3d   : > { %p1451_p7 = pnand %p1450_p3, %p1444_p1 }
  0x3f   : > { %1454 = shalt.err (!%p1451_p7)
}
  0x40   : > { %1296 = dma.hbm_to_vmem [thread:$0]  (!%p1691_p2), %s2398_s2, 32, %s1701_s11, [#allocation7]  }
  0x41   : > { %s29_s14 = sadd.s32 1, %s1571_s22  ;;  %s229_s15 = sand.u32 1, %s1575_s23  }
  0x42   : > { %p30_p10 = scmp.ge.s32.totalorder %s29_s14, 2  ;;  %s231_s16 = sand.u32 1, %s1563_s20  }
  0x43   : > { %s1180_s17 = sshll.u32 %s1571_s22, 8  ;;  %s1165_s9 = sshll.u32 %s231_s16, 9 }
  0x44   : > { %s2434_s14 = smov (%p30_p10, %s29_s14), 0  ;;  %s1767_s7 = scalar_lea.hbm %s2399_s3, %s1180_s17 }
  0x45   : > { %s104_s11 = ssub.s32 %s1571_s22, %s2434_s14  ;;  %s233_s8 = scalar_lea.vmem [#allocation8], %s1165_s9 }
  0x46   : > { %p105_p2 = scmp.eq.s32.totalorder %s104_s11, 0  ;;  %s240_s26 = sshll.u32 %s233_s8, 4  ;;  %s1771_s26 = int_to_ptr.vmem [resolvable:$true] %s240_s26 }
  0x47   : > { %s2416_s30 = sadd.s32 1, %s1563_s20  ;;  %s1778_s13 = scalar_lea.sflag [#allocation4], %s229_s15 }
  0x48   : > { %s1776_s10 = scalar_select %p105_p2, %s1563_s20, %s2416_s30  }
  0x49   : > { %s1455_s16 = scalar_lea.hbm %s1767_s7, 8192  ;;  %p1457_p9 = pneg %p1697_p4 }
  0x4a   : > { %p1456_p8 = scmp.ne.s32.totalorder %s1767_s7, %s1455_s16  ;;  %s1460_s9 = scalar_lea.hbm %s2399_s3, 16384 }
  0x4b   : > { %p1461_p5 = scmp.lt.u32.totalorder %s1767_s7, %s2399_s3  ;;  %p1462_p1 = scmp.lt.u32.totalorder %s1460_s9, %s1455_s16 }
  0x4c   : > { %p1458_p0 = pnand %p1457_p9, %p1456_p8  ;;  %p1464_p11 = scmp.lt.u32.totalorder %s1455_s16, %s1767_s7 }
  0x4d   : > { %p1463_p6 = por %p1462_p1, %p1461_p5 }
  0x4e   : > { %p1459_p13 = pneg %p1458_p0 }
  0x4f   : > { %p1465_p3 = por %p1464_p11, %p1463_p6 }
  0x51   : > { %p1466_p7 = pnand %p1465_p3, %p1459_p13 }
  0x53   : > { %1469 = shalt.err (!%p1466_p7)
}
  0x54   : > { %s1470_s15 = scalar_lea.vmem %s1771_s26, 8192  ;;  %s1581_s8 = smov [#allocation8]  }
  0x55   : > { %p1471_p10 = scmp.ne.s32.totalorder %s1771_s26, %s1470_s15  ;;  %s1475_s30 = sshll.u32 %s1581_s8, 4  ;;  %s1476_s30 = int_to_ptr.vmem [resolvable:$false] %s1475_s30 }
  0x56   : > { %s1477_s17 = scalar_lea.vmem %s1476_s30, 16384  ;;  %p1478_p0 = scmp.lt.s32.totalorder %s1771_s26, %s1476_s30 }
  0x57   : > { %p1473_p2 = pnand %p1471_p10, %p1457_p9  ;;  %p1479_p5 = scmp.lt.s32.totalorder %s1477_s17, %s1470_s15 }
  0x59   : > { %p1474_p8 = pneg %p1473_p2  ;;  %p1480_p1 = por %p1479_p5, %p1478_p0 }
  0x5b   : > { %p1481_p6 = pnand %p1480_p1, %p1474_p8 }
  0x5d   : > { %1484 = shalt.err (!%p1481_p6)
}
  0x5e   : > { %s1582_s16 = smov 512   ;;  %s2417_s25 = smov 16  }
  0x5f   : > { %s2418_s9 = smov 256   ;;  %260 = sbr.rel (%p1679_p12) target bundleno = 794 (0x31a), region = 40 }
  0x60   : > { %1300 = dma.hbm_to_vmem [thread:$0]  (!%p1697_p4), %s1767_s7, 8192, %s1771_s26, %s1778_s13, %s1582_s16, %s2418_s9, %s2417_s25  }
  0x61   : > { %p2419_p9 = scmp.eq.s32.totalorder (!%p1679_p12), %s1648_s24, 0 }
  0x66   : > { %1538 = dma.done.wait (%p2419_p9), [#allocation4], 4096   ;;  %p2420_p13 = pmov %p2419_p9 }
  0x67   : > { %p2421_p11 = pmov %p2419_p9 }
  0x68   : > { %1540 = vsyncadd (%p2420_p13), [#allocation4], 4294963200 }
  0x69   : > { %1542 = dma.done.wait (%p2421_p11), [#allocation7], 32   ;;  %p2422_p3 = pmov %p2419_p9 }
  0x6a   : > { %s270_s12 = sand.u32 1, %s1648_s24   ;;  %s1820_s13 = sand.u32 1, %s1559_s19  }
  0x6b   : > { %1544 = vsyncadd (%p2422_p3), [#allocation7], 4294967264  ;;  %s1171_s6 = sshll.u32 %s1820_s13, 9  ;;  %s271_s7 = scalar_lea.sflag [#allocation4], %s270_s12 }
  0x6c   : > { %s1823_s26 = scalar_lea.vmem [#allocation8], %s1171_s6  ;;  %p2423_p12 = scmp.ne.s32.totalorder %s2409_s28, 0 }
  0x6e   : > { %1546 = dma.done.wait (%p2423_p12), %s271_s7, 8192  }
  0x6f   : > { %1548 = vsyncadd (%p2423_p12), %s271_s7, 4294959104  ;;  %s1172_s27 = sshll.u32 %s1820_s13, 8  ;;  %s1173_s11 = sshll.u32 %s1567_s21, 1 }
  0x70   : > { %p308_p4 = scmp.lt.s32.totalorder %s1173_s11, 3  ;;  %s1837_s30 = scalar_lea.vmem [#allocation9], %s1172_s27 }
  0x71   : > { %p1174_p7 = scmp.ne.s32.totalorder %s1567_s21, 0 }
  0x72   : > { %s2436_s11 = smov (!%p308_p4, %s1173_s11), 3  ;;  %v1840_v0 = vld [vmem:[#allocation3] sm:$0xff] (!%p1174_p7)  ;;  %v1842_v1 = vld [vmem:[#allocation3 + $0x8] sm:$0xff] (!%p1174_p7)  ;;  %v1850_v5 = vld [vmem:[#allocation3 + $0x10] sm:$0xff] (!%p1174_p7) }
  0x73   : > { %s310_s8 = scalar_lea.vmem %s2400_s4, %s2436_s11  ;;  %317 = sbr.rel (%p1174_p7) target bundleno = 468 (0x1d4), region = 56  ;;  %v1844_v2 = vld [vmem:[#allocation3 + $0x20] sm:$0xff] (!%p1174_p7)  ;;  %v350_v3 = vadd.f32 (!%p1174_p7), %v1842_v1, %v1840_v0  ;;  %v1848_v4 = vld [vmem:[#allocation3 + $0x28] sm:$0xff] (!%p1174_p7)  ;;  %v1852_v6 = vld [vmem:[#allocation3 + $0x18] sm:$0xff] (!%p1174_p7) }
  0x74   : > { %v356_v7 = vadd.f32 (!%p1174_p7), %v1848_v4, %v1844_v2  ;;  %v1856_v8 = vld [vmem:[#allocation3 + $0x30] sm:$0xff] (!%p1174_p7)  ;;  %v1858_v9 = vld [vmem:[#allocation3 + $0x38] sm:$0xff] (!%p1174_p7)  ;;  %v353_v10 = vadd.f32 (!%p1174_p7), %v1852_v6, %v1850_v5  ;;  %v1864_v12 = vld [vmem:[#allocation3 + $0x40] sm:$0xff] (!%p1174_p7) }
  0x75   : > { %351 = vadd.xlane.f32.xlu0 (!%p1174_p7), %v350_v3  ;;  %v359_v11 = vadd.f32 (!%p1174_p7), %v1858_v9, %v1856_v8  ;;  %v1866_v13 = vld [vmem:[#allocation3 + $0x48] sm:$0xff] (!%p1174_p7)  ;;  %v1868_v14 = vld [vmem:[#allocation3 + $0x50] sm:$0xff] (!%p1174_p7)  ;;  %v1870_v15 = vld [vmem:[#allocation3 + $0x58] sm:$0xff] (!%p1174_p7) }
  0x76   : > { %357 = vadd.xlane.f32.xlu1 (!%p1174_p7), %v356_v7  ;;  %v362_v16 = vadd.f32 (!%p1174_p7), %v1866_v13, %v1864_v12  ;;  %v365_v17 = vadd.f32 (!%p1174_p7), %v1870_v15, %v1868_v14  ;;  %v1876_v18 = vld [vmem:[#allocation3 + $0x60] sm:$0xff] (!%p1174_p7)  ;;  %v1878_v19 = vld [vmem:[#allocation3 + $0x68] sm:$0xff] (!%p1174_p7)  ;;  %v1880_v20 = vld [vmem:[#allocation3 + $0x70] sm:$0xff] (!%p1174_p7) }
  0x77   : > { %v1882_v21 = vld [vmem:[#allocation3 + $0x78] sm:$0xff] (!%p1174_p7)  ;;  %v368_v22 = vadd.f32 (!%p1174_p7), %v1878_v19, %v1876_v18  ;;  %v1888_v24 = vld [vmem:[#allocation3 + $0x80] sm:$0xff] (!%p1174_p7)  ;;  %v1890_v25 = vld [vmem:[#allocation3 + $0x88] sm:$0xff] (!%p1174_p7) }
  0x78   : > { %v371_v23 = vadd.f32 (!%p1174_p7), %v1882_v21, %v1880_v20  ;;  %v1892_v26 = vld [vmem:[#allocation3 + $0x90] sm:$0xff] (!%p1174_p7)  ;;  %v1894_v27 = vld [vmem:[#allocation3 + $0x98] sm:$0xff] (!%p1174_p7)  ;;  %v374_v28 = vadd.f32 (!%p1174_p7), %v1890_v25, %v1888_v24  ;;  %v1900_v30 = vld [vmem:[#allocation3 + $0xa0] sm:$0xff] (!%p1174_p7) }
  0x79   : > { %354 = vadd.xlane.f32.xlu0 (!%p1174_p7), %v353_v10  ;;  %v377_v29 = vadd.f32 (!%p1174_p7), %v1894_v27, %v1892_v26  ;;  %v1902_v31 = vld [vmem:[#allocation3 + $0xa8] sm:$0xff] (!%p1174_p7)  ;;  %v1904_v32 = vld [vmem:[#allocation3 + $0xb0] sm:$0xff] (!%p1174_p7)  ;;  %v1906_v33 = vld [vmem:[#allocation3 + $0xb8] sm:$0xff] (!%p1174_p7) }
  0x7a   : > { %360 = vadd.xlane.f32.xlu1 %v359_v11  ;;  %v380_v34 = vadd.f32 %v1902_v31, %v1900_v30  ;;  %v383_v35 = vadd.f32 %v1906_v33, %v1904_v32  ;;  %v1912_v36 = vld [vmem:[#allocation3 + $0xc0] sm:$0xff]  ;;  %v1914_v37 = vld [vmem:[#allocation3 + $0xc8] sm:$0xff]  ;;  %v1916_v38 = vld [vmem:[#allocation3 + $0xd0] sm:$0xff] }
  0x7b   : > { %v1918_v39 = vld [vmem:[#allocation3 + $0xd8] sm:$0xff]  ;;  %v386_v40 = vadd.f32 %v1914_v37, %v1912_v36  ;;  %v1924_v42 = vld [vmem:[#allocation3 + $0xe0] sm:$0xff]  ;;  %v1926_v43 = vld [vmem:[#allocation3 + $0xe8] sm:$0xff] }
  0x7c   : > { %v389_v41 = vadd.f32 %v1918_v39, %v1916_v38  ;;  %v1928_v44 = vld [vmem:[#allocation3 + $0xf0] sm:$0xff]  ;;  %v1930_v45 = vld [vmem:[#allocation3 + $0xf8] sm:$0xff]  ;;  %v392_v46 = vadd.f32 %v1926_v43, %v1924_v42 }
  0x7d   : > { %363 = vadd.xlane.f32.xlu0 %v362_v16  ;;  %v395_v47 = vadd.f32 %v1930_v45, %v1928_v44 }
  0x7e   : > { %366 = vadd.xlane.f32.xlu1 %v365_v17 }
  0x81   : > { %369 = vadd.xlane.f32.xlu0 %v368_v22 }
  0x82   : > { %372 = vadd.xlane.f32.xlu1 %v371_v23 }
  0x85   : > { %375 = vadd.xlane.f32.xlu0 %v374_v28 }
  0x86   : > { %378 = vadd.xlane.f32.xlu1 %v377_v29 }
  0x89   : > { %381 = vadd.xlane.f32.xlu0 %v380_v34 }
  0x8a   : > { %384 = vadd.xlane.f32.xlu1 %v383_v35 }
  0x8d   : > { %387 = vadd.xlane.f32.xlu0 %v386_v40 }
  0x8e   : > { %390 = vadd.xlane.f32.xlu1 %v389_v41 }
  0x91   : > { %393 = vadd.xlane.f32.xlu0 %v392_v46 }
  0x92   : > { %396 = vadd.xlane.f32.xlu1 %v395_v47 }
 0x102   : > { %v352_v48 = vpop.xlane.xlu0 %351 }
 0x103   : > { %v399_v49 = vmul.f32 0.00390625, %v352_v48  ;;  %v358_v50 = vpop.xlane.xlu1 %357 }
 0x104   : > { %v401_v51 = vmul.f32 0.00390625, %v358_v50 }
 0x105   : > { %v1937_v52 = vsub.f32 %v1840_v0, %v399_v49  ;;  %v1940_v53 = vsub.f32 %v1842_v1, %v399_v49 }
 0x106   : > { %v1943_v54 = vsub.f32 %v1844_v2, %v401_v51  ;;  %v1946_v55 = vsub.f32 %v1848_v4, %v401_v51  ;;  %v355_v56 = vpop.xlane.xlu0 %354 }
 0x107   : > { %v400_v57 = vmul.f32 0.00390625, %v355_v56  ;;  %v361_v58 = vpop.xlane.xlu1 %360  ;;  %v447_v59 = vmul.f32 %v1937_v52, %v1937_v52  ;;  %v448_v60 = vmul.f32 %v1940_v53, %v1940_v53 }
 0x108   : > { %v402_v61 = vmul.f32 0.00390625, %v361_v58  ;;  %v451_v62 = vmul.f32 %v1943_v54, %v1943_v54  ;;  %v452_v63 = vmul.f32 %v1946_v55, %v1946_v55 }
 0x109   : > { %v1957_v0 = vsub.f32 %v1850_v5, %v400_v57  ;;  %v1960_v1 = vsub.f32 %v1852_v6, %v400_v57  ;;  %v479_v2 = vadd.f32 %v448_v60, %v447_v59 }
 0x10a   : > { %v1963_v3 = vsub.f32 %v1856_v8, %v402_v61  ;;  %v1966_v4 = vsub.f32 %v1858_v9, %v402_v61  ;;  %v364_v7 = vpop.xlane.xlu0 %363  ;;  %v485_v16 = vadd.f32 %v452_v63, %v451_v62 }
 0x10b   : > { %v403_v10 = vmul.f32 0.00390625, %v364_v7  ;;  %480 = vadd.xlane.f32.xlu0 %v479_v2  ;;  %v367_v11 = vpop.xlane.xlu1 %366  ;;  %v449_v17 = vmul.f32 %v1957_v0, %v1957_v0  ;;  %v450_v5 = vmul.f32 %v1960_v1, %v1960_v1 }
 0x10c   : > { %v404_v6 = vmul.f32 0.00390625, %v367_v11  ;;  %v453_v22 = vmul.f32 %v1963_v3, %v1963_v3  ;;  %v454_v8 = vmul.f32 %v1966_v4, %v1966_v4 }
 0x10d   : > { %v1977_v9 = vsub.f32 %v1864_v12, %v403_v10  ;;  %v1980_v23 = vsub.f32 %v1866_v13, %v403_v10  ;;  %v482_v28 = vadd.f32 %v450_v5, %v449_v17 }
 0x10e   : > { %v1983_v29 = vsub.f32 %v1868_v14, %v404_v6  ;;  %v1986_v34 = vsub.f32 %v1870_v15, %v404_v6  ;;  %v370_v35 = vpop.xlane.xlu0 %369  ;;  %v488_v46 = vadd.f32 %v454_v8, %v453_v22 }
 0x10f   : > { %v405_v40 = vmul.f32 0.00390625, %v370_v35  ;;  %486 = vadd.xlane.f32.xlu0 %v485_v16  ;;  %483 = vadd.xlane.f32.xlu1 %v482_v28  ;;  %v373_v41 = vpop.xlane.xlu1 %372  ;;  %v455_v12 = vmul.f32 %v1977_v9, %v1977_v9  ;;  %v456_v13 = vmul.f32 %v1980_v23, %v1980_v23 }
 0x110   : > { %v406_v47 = vmul.f32 0.00390625, %v373_v41  ;;  %v457_v14 = vmul.f32 %v1983_v29, %v1983_v29  ;;  %v458_v15 = vmul.f32 %v1986_v34, %v1986_v34 }
 0x111   : > { %v1997_v48 = vsub.f32 %v1876_v18, %v405_v40  ;;  %v2000_v49 = vsub.f32 %v1878_v19, %v405_v40  ;;  %v491_v50 = vadd.f32 %v456_v13, %v455_v12 }
 0x112   : > { %v2003_v51 = vsub.f32 %v1880_v20, %v406_v47  ;;  %v2006_v56 = vsub.f32 %v1882_v21, %v406_v47  ;;  %v376_v57 = vpop.xlane.xlu0 %375  ;;  %v494_v60 = vadd.f32 %v458_v15, %v457_v14 }
 0x113   : > { %v407_v58 = vmul.f32 0.00390625, %v376_v57  ;;  %489 = vadd.xlane.f32.xlu1 %v488_v46  ;;  %492 = vadd.xlane.f32.xlu0 %v491_v50  ;;  %v379_v59 = vpop.xlane.xlu1 %378  ;;  %v459_v18 = vmul.f32 %v1997_v48, %v1997_v48  ;;  %v460_v19 = vmul.f32 %v2000_v49, %v2000_v49 }
 0x114   : > { %v408_v61 = vmul.f32 0.00390625, %v379_v59  ;;  %v461_v20 = vmul.f32 %v2003_v51, %v2003_v51  ;;  %v462_v21 = vmul.f32 %v2006_v56, %v2006_v56 }
 0x115   : > { %v2017_v62 = vsub.f32 %v1888_v24, %v407_v58  ;;  %v2020_v63 = vsub.f32 %v1890_v25, %v407_v58  ;;  %v497_v2 = vadd.f32 %v460_v19, %v459_v18 }
 0x116   : > { %v2023_v7 = vsub.f32 %v1892_v26, %v408_v61  ;;  %v2026_v10 = vsub.f32 %v1894_v27, %v408_v61  ;;  %v382_v11 = vpop.xlane.xlu0 %381  ;;  %v500_v5 = vadd.f32 %v462_v21, %v461_v20 }
 0x117   : > { %v409_v16 = vmul.f32 0.00390625, %v382_v11  ;;  %495 = vadd.xlane.f32.xlu1 %v494_v60  ;;  %498 = vadd.xlane.f32.xlu0 %v497_v2  ;;  %v385_v17 = vpop.xlane.xlu1 %384  ;;  %v463_v24 = vmul.f32 %v2017_v62, %v2017_v62  ;;  %v464_v25 = vmul.f32 %v2020_v63, %v2020_v63 }
 0x118   : > { %v410_v6 = vmul.f32 0.00390625, %v385_v17  ;;  %v465_v26 = vmul.f32 %v2023_v7, %v2023_v7  ;;  %v466_v27 = vmul.f32 %v2026_v10, %v2026_v10 }
 0x119   : > { %v2037_v22 = vsub.f32 %v1900_v30, %v409_v16  ;;  %v2040_v8 = vsub.f32 %v1902_v31, %v409_v16  ;;  %v503_v28 = vadd.f32 %v464_v25, %v463_v24 }
 0x11a   : > { %v2043_v35 = vsub.f32 %v1904_v32, %v410_v6  ;;  %v2046_v40 = vsub.f32 %v1906_v33, %v410_v6  ;;  %v388_v41 = vpop.xlane.xlu0 %387  ;;  %v506_v13 = vadd.f32 %v466_v27, %v465_v26  ;;  %v609_v26 = vlaneseq }
 0x11b   : > { %v411_v46 = vmul.f32 0.00390625, %v388_v41  ;;  %501 = vadd.xlane.f32.xlu1 %v500_v5  ;;  %504 = vadd.xlane.f32.xlu0 %v503_v28  ;;  %v391_v12 = vpop.xlane.xlu1 %390  ;;  %v467_v30 = vmul.f32 %v2037_v22, %v2037_v22  ;;  %v468_v31 = vmul.f32 %v2040_v8, %v2040_v8 }
 0x11c   : > { %v412_v47 = vmul.f32 0.00390625, %v391_v12  ;;  %v469_v32 = vmul.f32 %v2043_v35, %v2043_v35  ;;  %v470_v33 = vmul.f32 %v2046_v40, %v2046_v40 }
 0x11d   : > { %v2057_v14 = vsub.f32 %v1912_v36, %v411_v46  ;;  %v2060_v15 = vsub.f32 %v1914_v37, %v411_v46  ;;  %v509_v50 = vadd.f32 %v468_v31, %v467_v30 }
 0x11e   : > { %v2063_v57 = vsub.f32 %v1916_v38, %v412_v47  ;;  %v2066_v58 = vsub.f32 %v1918_v39, %v412_v47  ;;  %v394_v59 = vpop.xlane.xlu0 %393  ;;  %v512_v19 = vadd.f32 %v470_v33, %v469_v32 }
 0x11f   : > { %v413_v60 = vmul.f32 0.00390625, %v394_v59  ;;  %507 = vadd.xlane.f32.xlu1 %v506_v13  ;;  %510 = vadd.xlane.f32.xlu0 %v509_v50  ;;  %v397_v18 = vpop.xlane.xlu1 %396  ;;  %v471_v36 = vmul.f32 %v2057_v14, %v2057_v14  ;;  %v472_v37 = vmul.f32 %v2060_v15, %v2060_v15  ;;  %v610_v13 = vshrl.u32 %v609_v26, 7 }
 0x120   : > { %v414_v61 = vmul.f32 0.00390625, %v397_v18  ;;  %v473_v38 = vmul.f32 %v2063_v57, %v2063_v57  ;;  %v474_v39 = vmul.f32 %v2066_v58, %v2066_v58  ;;  %v607_v18 = vld [vmem:[%s2397_s1] sm:$0x3] }
 0x121   : > { %v2077_v20 = vsub.f32 %v1924_v42, %v413_v60  ;;  %v2080_v21 = vsub.f32 %v1926_v43, %v413_v60  ;;  %v515_v2 = vadd.f32 %v472_v37, %v471_v36  ;;  %v611_v59 = vsub.s32 0, %v610_v13 }
 0x122   : > { %v2083_v11 = vsub.f32 %v1928_v44, %v414_v61  ;;  %v2086_v16 = vsub.f32 %v1930_v45, %v414_v61  ;;  %v518_v17 = vadd.f32 %v474_v39, %v473_v38  ;;  %v615_v60 = vsub.s32 1, %v610_v13  ;;  %v651_v38 = vld [vmem:[#allocation6] sm:$0x3] }
 0x123   : > { %513 = vadd.xlane.f32.xlu1 %v512_v19  ;;  %516 = vadd.xlane.f32.xlu0 %v515_v2  ;;  %v475_v5 = vmul.f32 %v2077_v20, %v2077_v20  ;;  %v476_v42 = vmul.f32 %v2080_v21, %v2080_v21 }
 0x124   : > { %v477_v43 = vmul.f32 %v2083_v11, %v2083_v11  ;;  %v478_v24 = vmul.f32 %v2086_v16, %v2086_v16 }
 0x125   : > { %v521_v44 = vadd.f32 %v476_v42, %v475_v5  ;;  %v2101_v5 = vrot.slane %v607_v18, %v615_v60 }
 0x126   : > { %v524_v45 = vadd.f32 %v478_v24, %v477_v43 }
 0x127   : > { %519 = vadd.xlane.f32.xlu1 %v518_v17  ;;  %522 = vadd.xlane.f32.xlu0 %v521_v44  ;;  %v2099_v17 = vrot.slane %v607_v18, %v611_v59  ;;  %v2103_v44 = vrot.slane %v651_v38, %v611_v59 }
 0x12b   : > { %525 = vadd.xlane.f32.xlu1 %v524_v45  ;;  %v2105_v45 = vrot.slane %v651_v38, %v615_v60 }
 0x198   : > { %v481_v25 = vpop.xlane.xlu0 %480 }
 0x199   : > { %v527_v6 = vmul.f32 0.00390625, %v481_v25 }
 0x19b   : > { %v543_v27 = vadd.f32 1e-05, %v527_v6 }
 0x19c   : > { %v484_v28 = vpop.xlane.xlu1 %483  ;;  %v487_v41 = vpop.xlane.xlu0 %486 }
 0x19d   : > { %1367 = vrsqrt.f32 %v543_v27  ;;  %v528_v46 = vmul.f32 0.00390625, %v484_v28  ;;  %v529_v12 = vmul.f32 0.00390625, %v487_v41 }
 0x19f   : > { %v544_v30 = vadd.f32 1e-05, %v528_v46  ;;  %v545_v31 = vadd.f32 1e-05, %v529_v12 }
 0x1a0   : > { %v490_v47 = vpop.xlane.xlu1 %489  ;;  %v493_v32 = vpop.xlane.xlu0 %492 }
 0x1a1   : > { %1369 = vrsqrt.f32 %v544_v30  ;;  %v530_v33 = vmul.f32 0.00390625, %v490_v47  ;;  %v531_v50 = vmul.f32 0.00390625, %v493_v32 }
 0x1a2   : > { %1371 = vrsqrt.f32 %v545_v31 }
 0x1a3   : > { %v546_v19 = vadd.f32 1e-05, %v530_v33  ;;  %v547_v36 = vadd.f32 1e-05, %v531_v50 }
 0x1a4   : > { %v496_v37 = vpop.xlane.xlu1 %495  ;;  %v499_v61 = vpop.xlane.xlu0 %498 }
 0x1a5   : > { %1373 = vrsqrt.f32 %v546_v19  ;;  %v532_v39 = vmul.f32 0.00390625, %v496_v37  ;;  %v533_v2 = vmul.f32 0.00390625, %v499_v61 }
 0x1a6   : > { %1375 = vrsqrt.f32 %v547_v36 }
 0x1a7   : > { %v1368_v42 = vpop.eup %1367  ;;  %v548_v43 = vadd.f32 1e-05, %v532_v39  ;;  %v549_v24 = vadd.f32 1e-05, %v533_v2 }
 0x1a8   : > { %v575_v25 = vmul.f32 %v1368_v42, %v1937_v52  ;;  %v576_v6 = vmul.f32 %v1368_v42, %v1940_v53  ;;  %v502_v26 = vpop.xlane.xlu1 %501  ;;  %v505_v27 = vpop.xlane.xlu0 %504 }
 0x1a9   : > { %1377 = vrsqrt.f32 %v548_v43  ;;  %v534_v28 = vmul.f32 0.00390625, %v502_v26  ;;  %v535_v41 = vmul.f32 0.00390625, %v505_v27 }
 0x1aa   : > { %v619_v46 = vmul.f32 %v2099_v17, %v575_v25  ;;  %v620_v12 = vmul.f32 %v2101_v5, %v576_v6  ;;  %1379 = vrsqrt.f32 %v549_v24 }
 0x1ab   : > { %v1370_v13 = vpop.eup %1369  ;;  %v550_v30 = vadd.f32 1e-05, %v534_v28  ;;  %v551_v31 = vadd.f32 1e-05, %v535_v41 }
 0x1ac   : > { %v1372_v47 = vpop.eup %1371  ;;  %v663_v32 = vadd.f32 %v2103_v44, %v619_v46  ;;  %v664_v52 = vadd.f32 %v2105_v45, %v620_v12  ;;  %v577_v53 = vmul.f32 %v1370_v13, %v1957_v0  ;;  %v578_v33 = vmul.f32 %v1370_v13, %v1960_v1  ;;  %v508_v50 = vpop.xlane.xlu1 %507 }
 0x1ad   : > { %v511_v59 = vpop.xlane.xlu0 %510  ;;  %v579_v60 = vmul.f32 %v1372_v47, %v1943_v54  ;;  %v580_v18 = vmul.f32 %v1372_v47, %v1946_v55  ;;  %1381 = vrsqrt.f32 %v550_v30  ;;  %v536_v19 = vmul.f32 0.00390625, %v508_v50 }
 0x1ae   : > { %695 = vst [vmem:[#allocation2] sm:$0xff] %v663_v32  ;;  %696 = vst [vmem:[#allocation2 + $0x8] sm:$0xff] %v664_v52  ;;  %v621_v36 = vmul.f32 %v2099_v17, %v577_v53  ;;  %v622_v37 = vmul.f32 %v2101_v5, %v578_v33  ;;  %1383 = vrsqrt.f32 %v551_v31  ;;  %v537_v61 = vmul.f32 0.00390625, %v511_v59 }
 0x1af   : > { %v1374_v38 = vpop.eup %1373  ;;  %v623_v0 = vmul.f32 %v2099_v17, %v579_v60  ;;  %v624_v1 = vmul.f32 %v2101_v5, %v580_v18  ;;  %v552_v39 = vadd.f32 1e-05, %v536_v19 }
 0x1b0   : > { %v1376_v2 = vpop.eup %1375  ;;  %v665_v54 = vadd.f32 %v2103_v44, %v621_v36  ;;  %v666_v55 = vadd.f32 %v2105_v45, %v622_v37  ;;  %v581_v42 = vmul.f32 %v1374_v38, %v1963_v3  ;;  %v582_v43 = vmul.f32 %v1374_v38, %v1966_v4  ;;  %v514_v24 = vpop.xlane.xlu1 %513 }
 0x1b1   : > { %v517_v25 = vpop.xlane.xlu0 %516  ;;  %v667_v6 = vadd.f32 %v2103_v44, %v623_v0  ;;  %v668_v26 = vadd.f32 %v2105_v45, %v624_v1  ;;  %v583_v27 = vmul.f32 %v1376_v2, %v1977_v9  ;;  %v584_v28 = vmul.f32 %v1376_v2, %v1980_v23 }
 0x1b2   : > { %697 = vst [vmem:[#allocation2 + $0x10] sm:$0xff] %v665_v54  ;;  %698 = vst [vmem:[#allocation2 + $0x18] sm:$0xff] %v666_v55  ;;  %v625_v41 = vmul.f32 %v2099_v17, %v581_v42  ;;  %v626_v46 = vmul.f32 %v2101_v5, %v582_v43  ;;  %1385 = vrsqrt.f32 %v552_v39  ;;  %v553_v3 = vadd.f32 1e-05, %v537_v61 }
 0x1b3   : > { %v1378_v12 = vpop.eup %1377  ;;  %699 = vst [vmem:[#allocation2 + $0x20] sm:$0xff] %v667_v6  ;;  %700 = vst [vmem:[#allocation2 + $0x28] sm:$0xff] %v668_v26  ;;  %v627_v4 = vmul.f32 %v2099_v17, %v583_v27  ;;  %v628_v13 = vmul.f32 %v2101_v5, %v584_v28  ;;  %v538_v30 = vmul.f32 0.00390625, %v514_v24  ;;  %v539_v31 = vmul.f32 0.00390625, %v517_v25 }
 0x1b4   : > { %v1380_v9 = vpop.eup %1379  ;;  %v669_v23 = vadd.f32 %v2103_v44, %v625_v41  ;;  %v670_v47 = vadd.f32 %v2105_v45, %v626_v46  ;;  %v585_v32 = vmul.f32 %v1378_v12, %v1983_v29  ;;  %v586_v52 = vmul.f32 %v1378_v12, %v1986_v34  ;;  %v520_v53 = vpop.xlane.xlu1 %519 }
 0x1b5   : > { %v671_v33 = vadd.f32 %v2103_v44, %v627_v4  ;;  %v672_v50 = vadd.f32 %v2105_v45, %v628_v13  ;;  %v587_v59 = vmul.f32 %v1380_v9, %v1997_v48  ;;  %v588_v60 = vmul.f32 %v1380_v9, %v2000_v49  ;;  %v523_v2 = vpop.xlane.xlu0 %522 }
 0x1b6   : > { %701 = vst [vmem:[#allocation2 + $0x30] sm:$0xff] %v669_v23  ;;  %702 = vst [vmem:[#allocation2 + $0x38] sm:$0xff] %v670_v47  ;;  %v629_v18 = vmul.f32 %v2099_v17, %v585_v32  ;;  %v630_v19 = vmul.f32 %v2101_v5, %v586_v52  ;;  %1387 = vrsqrt.f32 %v553_v3  ;;  %v554_v36 = vadd.f32 1e-05, %v538_v30 }
 0x1b7   : > { %v1382_v29 = vpop.eup %1381  ;;  %703 = vst [vmem:[#allocation2 + $0x40] sm:$0xff] %v671_v33  ;;  %704 = vst [vmem:[#allocation2 + $0x48] sm:$0xff] %v672_v50  ;;  %v631_v34 = vmul.f32 %v2099_v17, %v587_v59  ;;  %v632_v37 = vmul.f32 %v2101_v5, %v588_v60  ;;  %v555_v61 = vadd.f32 1e-05, %v539_v31  ;;  %v540_v38 = vmul.f32 0.00390625, %v520_v53 }
 0x1b8   : > { %v1384_v48 = vpop.eup %1383  ;;  %v673_v49 = vadd.f32 %v2103_v44, %v629_v18  ;;  %v674_v0 = vadd.f32 %v2105_v45, %v630_v19  ;;  %v589_v1 = vmul.f32 %v1382_v29, %v2003_v51  ;;  %v590_v39 = vmul.f32 %v1382_v29, %v2006_v56  ;;  %v526_v24 = vpop.xlane.xlu1 %525 }
 0x1b9   : > { %v675_v54 = vadd.f32 %v2103_v44, %v631_v34  ;;  %v676_v55 = vadd.f32 %v2105_v45, %v632_v37  ;;  %v591_v42 = vmul.f32 %v1384_v48, %v2017_v62  ;;  %v592_v43 = vmul.f32 %v1384_v48, %v2020_v63 }
 0x1ba   : > { %705 = vst [vmem:[#allocation2 + $0x50] sm:$0xff] %v673_v49  ;;  %706 = vst [vmem:[#allocation2 + $0x58] sm:$0xff] %v674_v0  ;;  %v633_v25 = vmul.f32 %v2099_v17, %v589_v1  ;;  %v634_v6 = vmul.f32 %v2101_v5, %v590_v39  ;;  %1389 = vrsqrt.f32 %v554_v36  ;;  %v556_v51 = vadd.f32 1e-05, %v540_v38 }
 0x1bb   : > { %707 = vst [vmem:[#allocation2 + $0x60] sm:$0xff] %v675_v54  ;;  %708 = vst [vmem:[#allocation2 + $0x68] sm:$0xff] %v676_v55  ;;  %v635_v56 = vmul.f32 %v2099_v17, %v591_v42  ;;  %v636_v26 = vmul.f32 %v2101_v5, %v592_v43  ;;  %1391 = vrsqrt.f32 %v555_v61  ;;  %v541_v27 = vmul.f32 0.00390625, %v523_v2 }
 0x1bc   : > { %v1386_v62 = vpop.eup %1385  ;;  %v677_v63 = vadd.f32 %v2103_v44, %v633_v25  ;;  %v678_v28 = vadd.f32 %v2105_v45, %v634_v6  ;;  %1393 = vrsqrt.f32 %v556_v51  ;;  %v542_v41 = vmul.f32 0.00390625, %v526_v24 }
 0x1bd   : > { %v679_v46 = vadd.f32 %v2103_v44, %v635_v56  ;;  %v680_v3 = vadd.f32 %v2105_v45, %v636_v26  ;;  %v593_v12 = vmul.f32 %v1386_v62, %v2023_v7  ;;  %v594_v4 = vmul.f32 %v1386_v62, %v2026_v10 }
 0x1be   : > { %709 = vst [vmem:[#allocation2 + $0x70] sm:$0xff] %v677_v63  ;;  %710 = vst [vmem:[#allocation2 + $0x78] sm:$0xff] %v678_v28  ;;  %v557_v13 = vadd.f32 1e-05, %v541_v27  ;;  %v558_v30 = vadd.f32 1e-05, %v542_v41 }
 0x1bf   : > { %711 = vst [vmem:[#allocation2 + $0x80] sm:$0xff] %v679_v46  ;;  %712 = vst [vmem:[#allocation2 + $0x88] sm:$0xff] %v680_v3  ;;  %v637_v31 = vmul.f32 %v2099_v17, %v593_v12  ;;  %v638_v9 = vmul.f32 %v2101_v5, %v594_v4 }
 0x1c0   : > { %v1388_v23 = vpop.eup %1387  ;;  %1395 = vrsqrt.f32 %v557_v13 }
 0x1c1   : > { %v681_v47 = vadd.f32 %v2103_v44, %v637_v31  ;;  %v682_v32 = vadd.f32 %v2105_v45, %v638_v9  ;;  %v595_v7 = vmul.f32 %v1388_v23, %v2037_v22  ;;  %v596_v10 = vmul.f32 %v1388_v23, %v2040_v8 }
 0x1c2   : > { %1397 = vrsqrt.f32 %v558_v30 }
 0x1c3   : > { %713 = vst [vmem:[#allocation2 + $0x90] sm:$0xff] %v681_v47  ;;  %714 = vst [vmem:[#allocation2 + $0x98] sm:$0xff] %v682_v32  ;;  %v639_v52 = vmul.f32 %v2099_v17, %v595_v7  ;;  %v640_v53 = vmul.f32 %v2101_v5, %v596_v10 }
 0x1c4   : > { %v1390_v33 = vpop.eup %1389 }
 0x1c5   : > { %v1392_v50 = vpop.eup %1391  ;;  %v683_v59 = vadd.f32 %v2103_v44, %v639_v52  ;;  %v684_v60 = vadd.f32 %v2105_v45, %v640_v53  ;;  %v597_v18 = vmul.f32 %v1390_v33, %v2043_v35  ;;  %v598_v19 = vmul.f32 %v1390_v33, %v2046_v40 }
 0x1c6   : > { %v1394_v22 = vpop.eup %1393  ;;  %v599_v8 = vmul.f32 %v1392_v50, %v2057_v14  ;;  %v600_v36 = vmul.f32 %v1392_v50, %v2060_v15 }
 0x1c7   : > { %715 = vst [vmem:[#allocation2 + $0xa0] sm:$0xff] %v683_v59  ;;  %716 = vst [vmem:[#allocation2 + $0xa8] sm:$0xff] %v684_v60  ;;  %v641_v29 = vmul.f32 %v2099_v17, %v597_v18  ;;  %v642_v34 = vmul.f32 %v2101_v5, %v598_v19  ;;  %v601_v37 = vmul.f32 %v1394_v22, %v2063_v57 }
 0x1c8   : > { %v602_v61 = vmul.f32 %v1394_v22, %v2066_v58  ;;  %v643_v38 = vmul.f32 %v2099_v17, %v599_v8  ;;  %v644_v35 = vmul.f32 %v2101_v5, %v600_v36 }
 0x1c9   : > { %v685_v40 = vadd.f32 %v2103_v44, %v641_v29  ;;  %v686_v14 = vadd.f32 %v2105_v45, %v642_v34  ;;  %v645_v15 = vmul.f32 %v2099_v17, %v601_v37 }
 0x1ca   : > { %v646_v48 = vmul.f32 %v2101_v5, %v602_v61  ;;  %v1396_v49 = vpop.eup %1395  ;;  %v687_v0 = vadd.f32 %v2103_v44, %v643_v38  ;;  %v688_v1 = vadd.f32 %v2105_v45, %v644_v35 }
 0x1cb   : > { %717 = vst [vmem:[#allocation2 + $0xb0] sm:$0xff] %v685_v40  ;;  %718 = vst [vmem:[#allocation2 + $0xb8] sm:$0xff] %v686_v14  ;;  %v689_v57 = vadd.f32 %v2103_v44, %v645_v15  ;;  %v603_v39 = vmul.f32 %v1396_v49, %v2077_v20  ;;  %v604_v2 = vmul.f32 %v1396_v49, %v2080_v21 }
 0x1cc   : > { %v690_v58 = vadd.f32 %v2105_v45, %v646_v48  ;;  %v1398_v54 = vpop.eup %1397  ;;  %719 = vst [vmem:[#allocation2 + $0xc0] sm:$0xff] %v687_v0  ;;  %720 = vst [vmem:[#allocation2 + $0xc8] sm:$0xff] %v688_v1 }
 0x1cd   : > { %721 = vst [vmem:[#allocation2 + $0xd0] sm:$0xff] %v689_v57  ;;  %v647_v55 = vmul.f32 %v2099_v17, %v603_v39  ;;  %v648_v42 = vmul.f32 %v2101_v5, %v604_v2  ;;  %v605_v43 = vmul.f32 %v1398_v54, %v2083_v11  ;;  %v606_v24 = vmul.f32 %v1398_v54, %v2086_v16 }
 0x1ce   : > { %722 = vst [vmem:[#allocation2 + $0xd8] sm:$0xff] %v690_v58 }
 0x1cf   : > { %v691_v25 = vadd.f32 %v2103_v44, %v647_v55  ;;  %v692_v6 = vadd.f32 %v2105_v45, %v648_v42  ;;  %v649_v20 = vmul.f32 %v2099_v17, %v605_v43  ;;  %v650_v21 = vmul.f32 %v2101_v5, %v606_v24 }
 0x1d1   : > { %723 = vst [vmem:[#allocation2 + $0xe0] sm:$0xff] %v691_v25  ;;  %724 = vst [vmem:[#allocation2 + $0xe8] sm:$0xff] %v692_v6  ;;  %v693_v51 = vadd.f32 %v2103_v44, %v649_v20  ;;  %v694_v56 = vadd.f32 %v2105_v45, %v650_v21 }
 0x1d3   : > { %725 = vst [vmem:[#allocation2 + $0xf0] sm:$0xff] %v693_v51  ;;  %726 = vst [vmem:[#allocation2 + $0xf8] sm:$0xff] %v694_v56 }
 0x1d4 PF: > { %v760_v11 = vld [vmem:[%s1823_s26 + $0x8] sm:$0xff]  ;;  %v762_v16 = vld [vmem:[%s1823_s26 + $0x18] sm:$0xff]  ;;  %v759_v17 = vld [vmem:[%s1823_s26] sm:$0xff]  ;;  %s1181_s9 = sshll.u32 %s1567_s21, 8  ;;  %s1045_s12 = sshll.u32 %s1837_s30, 4  ;;  %s2341_s12 = int_to_ptr.vmem [resolvable:$true] %s1045_s12 }
 0x1d5   : > { %v1182_v5 = vpack.c.bf16 %v762_v16, %v760_v11  ;;  %v761_v44 = vld [vmem:[%s1823_s26 + $0x10] sm:$0xff]  ;;  %v764_v26 = vld [vmem:[%s1823_s26 + $0x28] sm:$0xff]  ;;  %v766_v45 = vld [vmem:[%s1823_s26 + $0x38] sm:$0xff]  ;;  %s2337_s21 = scalar_lea.hbm %s2401_s5, %s1181_s9  ;;  %s1485_s27 = scalar_lea.vmem %s2341_s12, 4096 }
 0x1d6   : > { %v1184_v27 = vpack.c.bf16 %v761_v44, %v759_v17  ;;  %v1186_v62 = vpack.c.bf16 %v766_v45, %v764_v26  ;;  %v763_v63 = vld [vmem:[%s1823_s26 + $0x20] sm:$0xff]  ;;  %v765_v28 = vld [vmem:[%s1823_s26 + $0x30] sm:$0xff]  ;;  %v768_v41 = vld [vmem:[%s1823_s26 + $0x48] sm:$0xff]  ;;  %p1486_p10 = scmp.ne.s32.totalorder %s2341_s12, %s1485_s27  ;;  %p2424_p2 = scmp.ne.s32.totalorder %s2410_s29, 0 }
 0x1d7   : > { %1183 = vmatprep.subr.bf16.mxu0 %v1182_v5  ;;  %1246 = vmatprep.subr.bf16.mxu1 %v1182_v5  ;;  %v770_v46 = vld [vmem:[%s1823_s26 + $0x58] sm:$0xff]  ;;  %v1188_v3 = vpack.c.bf16 %v765_v28, %v763_v63  ;;  %v767_v4 = vld [vmem:[%s1823_s26 + $0x40] sm:$0xff]  ;;  %v769_v13 = vld [vmem:[%s1823_s26 + $0x50] sm:$0xff]  ;;  %s1583_s11 = smov [#allocation9]  }
 0x1d8   : > { %1185 = vmatpush1.bf16.msra.mxu0 %v1184_v27  ;;  %1262 = vmatpush1.bf16.msra.mxu1 %v1184_v27  ;;  %v1190_v12 = vpack.c.bf16 %v770_v46, %v768_v41  ;;  %v772_v30 = vld [vmem:[%s1823_s26 + $0x68] sm:$0xff]  ;;  %v774_v31 = vld [vmem:[%s1823_s26 + $0x78] sm:$0xff]  ;;  %v1192_v9 = vpack.c.bf16 %v769_v13, %v767_v4  ;;  %v771_v47 = vld [vmem:[%s1823_s26 + $0x60] sm:$0xff]  ;;  %p1487_p8 = pnand %p1486_p10, %p2424_p2  ;;  %s1489_s24 = sshll.u32 %s1583_s11, 4  ;;  %s1490_s24 = int_to_ptr.vmem [resolvable:$false] %s1489_s24 }
 0x1d9   : > { %1187 = vmatprep.subr.bf16.mxu0 %v1186_v62  ;;  %1247 = vmatprep.subr.bf16.mxu1 %v1186_v62  ;;  %v1194_v23 = vpack.c.bf16 %v774_v31, %v772_v30  ;;  %v773_v32 = vld [vmem:[%s1823_s26 + $0x70] sm:$0xff]  ;;  %v776_v7 = vld [vmem:[%s1823_s26 + $0x88] sm:$0xff]  ;;  %v778_v10 = vld [vmem:[%s1823_s26 + $0x98] sm:$0xff]  ;;  %s1491_s15 = scalar_lea.vmem %s1490_s24, 8192  ;;  %p1492_p5 = scmp.lt.s32.totalorder %s2341_s12, %s1490_s24 }
 0x1da   : > { %v1196_v52 = vpack.c.bf16 %v773_v32, %v771_v47  ;;  %v1198_v53 = vpack.c.bf16 %v778_v10, %v776_v7  ;;  %v775_v33 = vld [vmem:[%s1823_s26 + $0x80] sm:$0xff]  ;;  %v777_v50 = vld [vmem:[%s1823_s26 + $0x90] sm:$0xff]  ;;  %v780_v59 = vld [vmem:[%s1823_s26 + $0xa8] sm:$0xff]  ;;  %p1488_p0 = pneg %p1487_p8  ;;  %p1493_p1 = scmp.lt.s32.totalorder %s1491_s15, %s1485_s27 }
 0x1db   : > { %v782_v60 = vld [vmem:[%s1823_s26 + $0xb8] sm:$0xff]  ;;  %v1200_v18 = vpack.c.bf16 %v777_v50, %v775_v33  ;;  %v779_v22 = vld [vmem:[%s1823_s26 + $0xa0] sm:$0xff]  ;;  %v781_v8 = vld [vmem:[%s1823_s26 + $0xb0] sm:$0xff] }
 0x1dc   : > { %1189 = vmatpush1.bf16.msra.mxu0 %v1188_v3  ;;  %1263 = vmatpush1.bf16.msra.mxu1 %v1188_v3  ;;  %v1202_v19 = vpack.c.bf16 %v782_v60, %v780_v59  ;;  %v784_v36 = vld [vmem:[%s1823_s26 + $0xc8] sm:$0xff]  ;;  %v786_v29 = vld [vmem:[%s1823_s26 + $0xd8] sm:$0xff]  ;;  %v1204_v34 = vpack.c.bf16 %v781_v8, %v779_v22  ;;  %v783_v37 = vld [vmem:[%s1823_s26 + $0xc0] sm:$0xff]  ;;  %p1494_p6 = por %p1493_p1, %p1492_p5 }
 0x1dd   : > { %1191 = vmatprep.subr.bf16.mxu0 %v1190_v12  ;;  %1248 = vmatprep.subr.bf16.mxu1 %v1190_v12  ;;  %v1206_v61 = vpack.c.bf16 %v786_v29, %v784_v36  ;;  %v785_v38 = vld [vmem:[%s1823_s26 + $0xd0] sm:$0xff]  ;;  %v728_v35 = vld [vmem:[#allocation2 + $0x8] sm:$0xff]  ;;  %v790_v15 = vld [vmem:[%s1823_s26 + $0xf8] sm:$0xff] }
 0x1de   : > { %v744_v40 = vld [vmem:[#allocation2 + $0x88] sm:$0xff]  ;;  %899 = vmatprep.mubr.f32.mxu0 %v728_v35  ;;  %v1208_v48 = vpack.c.bf16 %v785_v38, %v783_v37  ;;  %v789_v1 = vld [vmem:[%s1823_s26 + $0xf0] sm:$0xff]  ;;  %v794_v58 = vld [vmem:[%s1823_s26 + $0x118] sm:$0xff]  ;;  %p1495_p9 = pnand %p1494_p6, %p1488_p0 }
 0x1df   : > { %v788_v14 = vld [vmem:[%s1823_s26 + $0xe8] sm:$0xff]  ;;  %947 = vmatprep.mubr.f32.mxu1 %v744_v40  ;;  %v787_v0 = vld [vmem:[%s1823_s26 + $0xe0] sm:$0xff]  ;;  %v793_v55 = vld [vmem:[%s1823_s26 + $0x110] sm:$0xff] }
 0x1e0   : > { %1193 = vmatpush1.bf16.msra.mxu0 %v1192_v9  ;;  %1264 = vmatpush1.bf16.msra.mxu1 %v1192_v9  ;;  %v1210_v49 = vpack.c.bf16 %v790_v15, %v788_v14  ;;  %v792_v57 = vld [vmem:[%s1823_s26 + $0x108] sm:$0xff]  ;;  %v1212_v39 = vpack.c.bf16 %v789_v1, %v787_v0  ;;  %v791_v54 = vld [vmem:[%s1823_s26 + $0x100] sm:$0xff]  ;;  %v798_v43 = vld [vmem:[%s1823_s26 + $0x138] sm:$0xff] }
 0x1e1   : > { %1195 = vmatprep.subr.bf16.mxu0 %v1194_v23  ;;  %1249 = vmatprep.subr.bf16.mxu1 %v1194_v23  ;;  %v1214_v2 = vpack.c.bf16 %v794_v58, %v792_v57  ;;  %v796_v42 = vld [vmem:[%s1823_s26 + $0x128] sm:$0xff]  ;;  %v1216_v24 = vpack.c.bf16 %v793_v55, %v791_v54  ;;  %v795_v6 = vld [vmem:[%s1823_s26 + $0x120] sm:$0xff]  ;;  %v797_v20 = vld [vmem:[%s1823_s26 + $0x130] sm:$0xff] }
 0x1e2   : > { %v1218_v25 = vpack.c.bf16 %v798_v43, %v796_v42  ;;  %v800_v21 = vld [vmem:[%s1823_s26 + $0x148] sm:$0xff]  ;;  %v802_v51 = vld [vmem:[%s1823_s26 + $0x158] sm:$0xff]  ;;  %v1220_v56 = vpack.c.bf16 %v797_v20, %v795_v6  ;;  %v799_v16 = vld [vmem:[%s1823_s26 + $0x140] sm:$0xff] }
 0x1e3   : > { %v1222_v11 = vpack.c.bf16 %v802_v51, %v800_v21  ;;  %v801_v17 = vld [vmem:[%s1823_s26 + $0x150] sm:$0xff]  ;;  %v804_v5 = vld [vmem:[%s1823_s26 + $0x168] sm:$0xff]  ;;  %v806_v44 = vld [vmem:[%s1823_s26 + $0x178] sm:$0xff] }
 0x1e4   : > { %1197 = vmatpush1.bf16.msra.mxu0 %v1196_v52  ;;  %1265 = vmatpush1.bf16.msra.mxu1 %v1196_v52  ;;  %v1224_v26 = vpack.c.bf16 %v801_v17, %v799_v16  ;;  %v1226_v45 = vpack.c.bf16 %v806_v44, %v804_v5  ;;  %v803_v27 = vld [vmem:[%s1823_s26 + $0x160] sm:$0xff]  ;;  %v805_v62 = vld [vmem:[%s1823_s26 + $0x170] sm:$0xff]  ;;  %v808_v63 = vld [vmem:[%s1823_s26 + $0x188] sm:$0xff] }
 0x1e5   : > { %1199 = vmatprep.subr.bf16.mxu0 %v1198_v53  ;;  %1250 = vmatprep.subr.bf16.mxu1 %v1198_v53  ;;  %v810_v28 = vld [vmem:[%s1823_s26 + $0x198] sm:$0xff]  ;;  %v1228_v41 = vpack.c.bf16 %v805_v62, %v803_v27  ;;  %v807_v3 = vld [vmem:[%s1823_s26 + $0x180] sm:$0xff]  ;;  %v809_v12 = vld [vmem:[%s1823_s26 + $0x190] sm:$0xff] }
 0x1e6   : > { %v1230_v46 = vpack.c.bf16 %v810_v28, %v808_v63  ;;  %v812_v4 = vld [vmem:[%s1823_s26 + $0x1a8] sm:$0xff]  ;;  %v814_v13 = vld [vmem:[%s1823_s26 + $0x1b8] sm:$0xff]  ;;  %v1232_v30 = vpack.c.bf16 %v809_v12, %v807_v3  ;;  %v811_v9 = vld [vmem:[%s1823_s26 + $0x1a0] sm:$0xff] }
 0x1e7   : > { %v1234_v31 = vpack.c.bf16 %v814_v13, %v812_v4  ;;  %v813_v23 = vld [vmem:[%s1823_s26 + $0x1b0] sm:$0xff]  ;;  %v816_v47 = vld [vmem:[%s1823_s26 + $0x1c8] sm:$0xff]  ;;  %v818_v32 = vld [vmem:[%s1823_s26 + $0x1d8] sm:$0xff] }
 0x1e8   : > { %1201 = vmatpush1.bf16.msra.mxu0 %v1200_v18  ;;  %1266 = vmatpush1.bf16.msra.mxu1 %v1200_v18  ;;  %v1236_v7 = vpack.c.bf16 %v813_v23, %v811_v9  ;;  %v1238_v10 = vpack.c.bf16 %v818_v32, %v816_v47  ;;  %v815_v52 = vld [vmem:[%s1823_s26 + $0x1c0] sm:$0xff]  ;;  %v817_v53 = vld [vmem:[%s1823_s26 + $0x1d0] sm:$0xff]  ;;  %v820_v33 = vld [vmem:[%s1823_s26 + $0x1e8] sm:$0xff] }
 0x1e9   : > { %1203 = vmatprep.subr.bf16.mxu0 %v1202_v19  ;;  %1251 = vmatprep.subr.bf16.mxu1 %v1202_v19  ;;  %v822_v50 = vld [vmem:[%s1823_s26 + $0x1f8] sm:$0xff]  ;;  %v1240_v59 = vpack.c.bf16 %v817_v53, %v815_v52  ;;  %v819_v18 = vld [vmem:[%s1823_s26 + $0x1e0] sm:$0xff]  ;;  %v821_v19 = vld [vmem:[%s1823_s26 + $0x1f0] sm:$0xff]  ;;  %s1029_s26 = scalar_lea.sflag [#allocation5], %s1820_s13 }
 0x1ea   : > { %v1242_v60 = vpack.c.bf16 %v822_v50, %v820_v33  ;;  %v1244_v22 = vpack.c.bf16 %v821_v19, %v819_v18  ;;  %v727_v8 = vld [vmem:[#allocation2] sm:$0xff]  ;;  %v730_v29 = vld [vmem:[#allocation2 + $0x18] sm:$0xff]  ;;  %v729_v37 = vld [vmem:[#allocation2 + $0x10] sm:$0xff] }
 0x1eb   : > { %v743_v36 = vld [vmem:[#allocation2 + $0x80] sm:$0xff]  ;;  %v732_v38 = vld [vmem:[#allocation2 + $0x28] sm:$0xff]  ;;  %v734_v15 = vld [vmem:[#allocation2 + $0x38] sm:$0xff] }
 0x1ec   : > { %1205 = vmatpush1.bf16.msra.mxu0 %v1204_v34  ;;  %1267 = vmatpush1.bf16.msra.mxu1 %v1204_v34  ;;  %v746_v34 = vld [vmem:[#allocation2 + $0x98] sm:$0xff]  ;;  %v748_v35 = vld [vmem:[#allocation2 + $0xa8] sm:$0xff]  ;;  %v731_v40 = vld [vmem:[#allocation2 + $0x20] sm:$0xff] }
 0x1ed   : > { %1207 = vmatprep.subr.bf16.mxu0 %v1206_v61  ;;  %1252 = vmatprep.subr.bf16.mxu1 %v1206_v61  ;;  %v745_v61 = vld [vmem:[#allocation2 + $0x90] sm:$0xff]  ;;  %v747_v14 = vld [vmem:[#allocation2 + $0xa0] sm:$0xff]  ;;  %v736_v1 = vld [vmem:[#allocation2 + $0x48] sm:$0xff] }
 0x1ee   : > { %v749_v0 = vld [vmem:[#allocation2 + $0xb0] sm:$0xff]  ;;  %v752_v57 = vld [vmem:[#allocation2 + $0xc8] sm:$0xff]  ;;  %v735_v58 = vld [vmem:[#allocation2 + $0x40] sm:$0xff] }
 0x1ef   : > { %v754_v54 = vld [vmem:[#allocation2 + $0xd8] sm:$0xff]  ;;  %v737_v55 = vld [vmem:[#allocation2 + $0x50] sm:$0xff]  ;;  %v740_v43 = vld [vmem:[#allocation2 + $0x68] sm:$0xff] }
 0x1f0   : > { %1209 = vmatpush1.bf16.msra.mxu0 %v1208_v48  ;;  %1268 = vmatpush1.bf16.msra.mxu1 %v1208_v48  ;;  %v750_v48 = vld [vmem:[#allocation2 + $0xb8] sm:$0xff]  ;;  %v753_v42 = vld [vmem:[#allocation2 + $0xd0] sm:$0xff]  ;;  %v755_v6 = vld [vmem:[#allocation2 + $0xe0] sm:$0xff] }
 0x1f1   : > { %1211 = vmatprep.subr.bf16.mxu0 %v1210_v49  ;;  %1253 = vmatprep.subr.bf16.mxu1 %v1210_v49  ;;  %v733_v49 = vld [vmem:[#allocation2 + $0x30] sm:$0xff]  ;;  %v742_v20 = vld [vmem:[#allocation2 + $0x78] sm:$0xff]  ;;  %v823_v5 = vld [vmem:[%s310_s8] sm:$0x3] }
 0x1f2   : > { %v758_v21 = vld [vmem:[#allocation2 + $0xf8] sm:$0xff]  ;;  %v741_v51 = vld [vmem:[#allocation2 + $0x70] sm:$0xff] }
 0x1f4   : > { %1213 = vmatpush1.bf16.msra.mxu0 %v1212_v39  ;;  %1269 = vmatpush1.bf16.msra.mxu1 %v1212_v39  ;;  %v751_v39 = vld [vmem:[#allocation2 + $0xc0] sm:$0xff] }
 0x1f5   : > { %1215 = vmatprep.subr.bf16.mxu0 %v1214_v2  ;;  %1254 = vmatprep.subr.bf16.mxu1 %v1214_v2  ;;  %v738_v2 = vld [vmem:[#allocation2 + $0x58] sm:$0xff] }
 0x1f8   : > { %1217 = vmatpush1.bf16.msra.mxu0 %v1216_v24  ;;  %1270 = vmatpush1.bf16.msra.mxu1 %v1216_v24  ;;  %v756_v24 = vld [vmem:[#allocation2 + $0xe8] sm:$0xff] }
 0x1f9   : > { %1219 = vmatprep.subr.bf16.mxu0 %v1218_v25  ;;  %1255 = vmatprep.subr.bf16.mxu1 %v1218_v25  ;;  %v739_v25 = vld [vmem:[#allocation2 + $0x60] sm:$0xff] }
 0x1fc   : > { %1221 = vmatpush1.bf16.msra.mxu0 %v1220_v56  ;;  %1271 = vmatpush1.bf16.msra.mxu1 %v1220_v56  ;;  %v757_v56 = vld [vmem:[#allocation2 + $0xf0] sm:$0xff] }
 0x1fd   : > { %1223 = vmatprep.subr.bf16.mxu0 %v1222_v11  ;;  %1256 = vmatprep.subr.bf16.mxu1 %v1222_v11  ;;  %v825_v11 = vlaneseq }
 0x1ff   : > { %v826_v16 = vshrl.u32 %v825_v11, 7 }
 0x200   : > { %1225 = vmatpush1.bf16.msra.mxu0 %v1224_v26  ;;  %1272 = vmatpush1.bf16.msra.mxu1 %v1224_v26 }
 0x201   : > { %1227 = vmatprep.subr.bf16.mxu0 %v1226_v45  ;;  %1257 = vmatprep.subr.bf16.mxu1 %v1226_v45  ;;  %v827_v17 = vsub.s32 0, %v826_v16  ;;  %v831_v44 = vsub.s32 1, %v826_v16 }
 0x203   : > { %v2272_v26 = vrot.slane %v823_v5, %v827_v17  ;;  %v2274_v45 = vrot.slane %v823_v5, %v831_v44 }
 0x204   : > { %1229 = vmatpush1.bf16.msra.mxu0 %v1228_v41  ;;  %1273 = vmatpush1.bf16.msra.mxu1 %v1228_v41 }
 0x205   : > { %1231 = vmatprep.subr.bf16.mxu0 %v1230_v46  ;;  %1258 = vmatprep.subr.bf16.mxu1 %v1230_v46 }
 0x208   : > { %1233 = vmatpush1.bf16.msra.mxu0 %v1232_v30  ;;  %1274 = vmatpush1.bf16.msra.mxu1 %v1232_v30 }
 0x209   : > { %1235 = vmatprep.subr.bf16.mxu0 %v1234_v31  ;;  %1259 = vmatprep.subr.bf16.mxu1 %v1234_v31 }
 0x20c   : > { %1237 = vmatpush1.bf16.msra.mxu0 %v1236_v7  ;;  %1275 = vmatpush1.bf16.msra.mxu1 %v1236_v7 }
 0x20d   : > { %1239 = vmatprep.subr.bf16.mxu0 %v1238_v10  ;;  %1260 = vmatprep.subr.bf16.mxu1 %v1238_v10 }
 0x210   : > { %1241 = vmatpush1.bf16.msra.mxu0 %v1240_v59  ;;  %1276 = vmatpush1.bf16.msra.mxu1 %v1240_v59 }
 0x211   : > { %1243 = vmatprep.subr.bf16.mxu0 %v1242_v60  ;;  %1261 = vmatprep.subr.bf16.mxu1 %v1242_v60 }
 0x214   : > { %1245 = vmatpush1.bf16.msra.mxu0 %v1244_v22  ;;  %1277 = vmatpush1.bf16.msra.mxu1 %v1244_v22 }
 0x217   : > { %900 = vmatmul.mubr.f32.vlgmr.msra.gmra.mrb[0].mxu0 %v727_v8  ;;  %948 = vmatmul.mubr.f32.vlgmr.msra.gmra.mrb[0].mxu1 %v743_v36 }
 0x218   : > { %905 = vmatprep.mubr.f32.mxu0 %v730_v29  ;;  %953 = vmatprep.mubr.f32.mxu1 %v746_v34 }
 0x21b   : > { %906 = vmatmul.mubr.f32.gmra.mrb[2].mxu0 %v729_v37  ;;  %954 = vmatmul.mubr.f32.gmra.mrb[2].mxu1 %v745_v61 }
 0x21c   : > { %911 = vmatprep.mubr.f32.mxu0 %v732_v38  ;;  %959 = vmatprep.mubr.f32.mxu1 %v748_v35 }
 0x21f   : > { %912 = vmatmul.mubr.f32.gmra.mrb[4].mxu0 %v731_v40  ;;  %960 = vmatmul.mubr.f32.gmra.mrb[4].mxu1 %v747_v14 }
 0x220   : > { %917 = vmatprep.mubr.f32.mxu0 %v734_v15  ;;  %965 = vmatprep.mubr.f32.mxu1 %v750_v48 }
 0x223   : > { %918 = vmatmul.mubr.f32.gmra.mrb[6].mxu0 %v733_v49  ;;  %966 = vmatmul.mubr.f32.gmra.mrb[6].mxu1 %v749_v0 }
 0x224   : > { %923 = vmatprep.mubr.f32.mxu0 %v736_v1  ;;  %971 = vmatprep.mubr.f32.mxu1 %v752_v57 }
 0x227   : > { %924 = vmatmul.mubr.f32.gmra.mrb[8].mxu0 %v735_v58  ;;  %972 = vmatmul.mubr.f32.gmra.mrb[8].mxu1 %v751_v39 }
 0x228   : > { %929 = vmatprep.mubr.f32.mxu0 %v738_v2  ;;  %977 = vmatprep.mubr.f32.mxu1 %v754_v54 }
 0x22b   : > { %930 = vmatmul.mubr.f32.gmra.mrb[10].mxu0 %v737_v55  ;;  %978 = vmatmul.mubr.f32.gmra.mrb[10].mxu1 %v753_v42 }
 0x22c   : > { %935 = vmatprep.mubr.f32.mxu0 %v740_v43  ;;  %983 = vmatprep.mubr.f32.mxu1 %v756_v24 }
 0x22f   : > { %936 = vmatmul.mubr.f32.gmra.mrb[12].mxu0 %v739_v25  ;;  %984 = vmatmul.mubr.f32.gmra.mrb[12].mxu1 %v755_v6 }
 0x230   : > { %941 = vmatprep.mubr.f32.mxu0 %v742_v20  ;;  %989 = vmatprep.mubr.f32.mxu1 %v758_v21 }
 0x233   : > { %942 = vmatmul.mubr.f32.gmra.mrb[14].mxu0 %v741_v51  ;;  %990 = vmatmul.mubr.f32.gmra.mrb[14].mxu1 %v757_v56 }
 0x2ea   : > { %v901_v27 = vpop.f32.mrb[0].mxu0  ;;  %v949_v62 = vpop.f32.mrb[0].mxu1 }
 0x2eb   : > { %v902_v63 = vadd.f32 %v901_v27, %v2272_v26  ;;  %v950_v28 = vadd.f32 %v949_v62, %v2272_v26  ;;  %v903_v41 = vpop.f32.mrb[1].mxu0  ;;  %v951_v46 = vpop.f32.mrb[1].mxu1 }
 0x2ec   : > { %v904_v3 = vadd.f32 %v903_v41, %v2274_v45  ;;  %v952_v12 = vadd.f32 %v951_v46, %v2274_v45 }
 0x2ed   : > { %996 = vst [vmem:[%s1837_s30] sm:$0xff] %v902_v63  ;;  %1012 = vst [vmem:[%s1837_s30 + $0x80] sm:$0xff] %v950_v28 }
 0x2ee   : > { %997 = vst [vmem:[%s1837_s30 + $0x8] sm:$0xff] %v904_v3  ;;  %1013 = vst [vmem:[%s1837_s30 + $0x88] sm:$0xff] %v952_v12  ;;  %v907_v4 = vpop.f32.mrb[2].mxu0  ;;  %v955_v13 = vpop.f32.mrb[2].mxu1 }
 0x2ef   : > { %v908_v30 = vadd.f32 %v907_v4, %v2272_v26  ;;  %v956_v31 = vadd.f32 %v955_v13, %v2272_v26  ;;  %v909_v9 = vpop.f32.mrb[3].mxu0  ;;  %v957_v23 = vpop.f32.mrb[3].mxu1 }
 0x2f0   : > { %v910_v47 = vadd.f32 %v909_v9, %v2274_v45  ;;  %v958_v32 = vadd.f32 %v957_v23, %v2274_v45 }
 0x2f1   : > { %998 = vst [vmem:[%s1837_s30 + $0x10] sm:$0xff] %v908_v30  ;;  %1014 = vst [vmem:[%s1837_s30 + $0x90] sm:$0xff] %v956_v31 }
 0x2f2   : > { %999 = vst [vmem:[%s1837_s30 + $0x18] sm:$0xff] %v910_v47  ;;  %1015 = vst [vmem:[%s1837_s30 + $0x98] sm:$0xff] %v958_v32  ;;  %v913_v7 = vpop.f32.mrb[4].mxu0  ;;  %v961_v10 = vpop.f32.mrb[4].mxu1 }
 0x2f3   : > { %v914_v52 = vadd.f32 %v913_v7, %v2272_v26  ;;  %v962_v53 = vadd.f32 %v961_v10, %v2272_v26  ;;  %v915_v33 = vpop.f32.mrb[5].mxu0  ;;  %v963_v50 = vpop.f32.mrb[5].mxu1 }
 0x2f4   : > { %v916_v59 = vadd.f32 %v915_v33, %v2274_v45  ;;  %v964_v60 = vadd.f32 %v963_v50, %v2274_v45 }
 0x2f5   : > { %1000 = vst [vmem:[%s1837_s30 + $0x20] sm:$0xff] %v914_v52  ;;  %1016 = vst [vmem:[%s1837_s30 + $0xa0] sm:$0xff] %v962_v53 }
 0x2f6   : > { %1001 = vst [vmem:[%s1837_s30 + $0x28] sm:$0xff] %v916_v59  ;;  %1017 = vst [vmem:[%s1837_s30 + $0xa8] sm:$0xff] %v964_v60  ;;  %v919_v18 = vpop.f32.mrb[6].mxu0  ;;  %v967_v19 = vpop.f32.mrb[6].mxu1 }
 0x2f7   : > { %v920_v22 = vadd.f32 %v919_v18, %v2272_v26  ;;  %v968_v8 = vadd.f32 %v967_v19, %v2272_v26  ;;  %v921_v36 = vpop.f32.mrb[7].mxu0  ;;  %v969_v29 = vpop.f32.mrb[7].mxu1 }
 0x2f8   : > { %v922_v34 = vadd.f32 %v921_v36, %v2274_v45  ;;  %v970_v37 = vadd.f32 %v969_v29, %v2274_v45 }
 0x2f9   : > { %1002 = vst [vmem:[%s1837_s30 + $0x30] sm:$0xff] %v920_v22  ;;  %1018 = vst [vmem:[%s1837_s30 + $0xb0] sm:$0xff] %v968_v8 }
 0x2fa   : > { %1003 = vst [vmem:[%s1837_s30 + $0x38] sm:$0xff] %v922_v34  ;;  %1019 = vst [vmem:[%s1837_s30 + $0xb8] sm:$0xff] %v970_v37  ;;  %v925_v61 = vpop.f32.mrb[8].mxu0  ;;  %v973_v38 = vpop.f32.mrb[8].mxu1 }
 0x2fb   : > { %v926_v35 = vadd.f32 %v925_v61, %v2272_v26  ;;  %v974_v40 = vadd.f32 %v973_v38, %v2272_v26  ;;  %v927_v14 = vpop.f32.mrb[9].mxu0  ;;  %v975_v15 = vpop.f32.mrb[9].mxu1 }
 0x2fc   : > { %v928_v48 = vadd.f32 %v927_v14, %v2274_v45  ;;  %v976_v49 = vadd.f32 %v975_v15, %v2274_v45 }
 0x2fd   : > { %1004 = vst [vmem:[%s1837_s30 + $0x40] sm:$0xff] %v926_v35  ;;  %1020 = vst [vmem:[%s1837_s30 + $0xc0] sm:$0xff] %v974_v40 }
 0x2fe   : > { %1005 = vst [vmem:[%s1837_s30 + $0x48] sm:$0xff] %v928_v48  ;;  %1021 = vst [vmem:[%s1837_s30 + $0xc8] sm:$0xff] %v976_v49  ;;  %v931_v0 = vpop.f32.mrb[10].mxu0  ;;  %v979_v1 = vpop.f32.mrb[10].mxu1 }
 0x2ff   : > { %v932_v57 = vadd.f32 %v931_v0, %v2272_v26  ;;  %v980_v58 = vadd.f32 %v979_v1, %v2272_v26  ;;  %v933_v39 = vpop.f32.mrb[11].mxu0  ;;  %v981_v2 = vpop.f32.mrb[11].mxu1 }
 0x300   : > { %v934_v54 = vadd.f32 %v933_v39, %v2274_v45  ;;  %v982_v55 = vadd.f32 %v981_v2, %v2274_v45 }
 0x301   : > { %1006 = vst [vmem:[%s1837_s30 + $0x50] sm:$0xff] %v932_v57  ;;  %1022 = vst [vmem:[%s1837_s30 + $0xd0] sm:$0xff] %v980_v58 }
 0x302   : > { %1007 = vst [vmem:[%s1837_s30 + $0x58] sm:$0xff] %v934_v54  ;;  %1023 = vst [vmem:[%s1837_s30 + $0xd8] sm:$0xff] %v982_v55  ;;  %v937_v42 = vpop.f32.mrb[12].mxu0  ;;  %v985_v43 = vpop.f32.mrb[12].mxu1 }
 0x303   : > { %v938_v24 = vadd.f32 %v937_v42, %v2272_v26  ;;  %v986_v25 = vadd.f32 %v985_v43, %v2272_v26  ;;  %v939_v6 = vpop.f32.mrb[13].mxu0  ;;  %v987_v20 = vpop.f32.mrb[13].mxu1 }
 0x304   : > { %v940_v21 = vadd.f32 %v939_v6, %v2274_v45  ;;  %v988_v51 = vadd.f32 %v987_v20, %v2274_v45 }
 0x305   : > { %1008 = vst [vmem:[%s1837_s30 + $0x60] sm:$0xff] %v938_v24  ;;  %1024 = vst [vmem:[%s1837_s30 + $0xe0] sm:$0xff] %v986_v25 }
 0x306   : > { %1009 = vst [vmem:[%s1837_s30 + $0x68] sm:$0xff] %v940_v21  ;;  %1025 = vst [vmem:[%s1837_s30 + $0xe8] sm:$0xff] %v988_v51  ;;  %v943_v56 = vpop.f32.mrb[14].mxu0  ;;  %v991_v11 = vpop.f32.mrb[14].mxu1 }
 0x307   : > { %v944_v16 = vadd.f32 %v943_v56, %v2272_v26  ;;  %v992_v17 = vadd.f32 %v991_v11, %v2272_v26  ;;  %v945_v5 = vpop.f32.mrb[15].mxu0  ;;  %v993_v44 = vpop.f32.mrb[15].mxu1 }
 0x308   : > { %v946_v27 = vadd.f32 %v945_v5, %v2274_v45  ;;  %v994_v62 = vadd.f32 %v993_v44, %v2274_v45 }
 0x309   : > { %1010 = vst [vmem:[%s1837_s30 + $0x70] sm:$0xff] %v944_v16  ;;  %1026 = vst [vmem:[%s1837_s30 + $0xf0] sm:$0xff] %v992_v17 }
 0x30a   : > { %1011 = vst [vmem:[%s1837_s30 + $0x78] sm:$0xff] %v946_v27  ;;  %1027 = vst [vmem:[%s1837_s30 + $0xf8] sm:$0xff] %v994_v62 }
 0x30b   : > { %1498 = shalt.err (!%p1495_p9)
}
 0x30c   : > { %s1499_s8 = scalar_lea.hbm %s2337_s21, 4096  ;;  %s1503_s17 = scalar_lea.hbm %s2401_s5, 8192 }
 0x30d   : > { %p1500_p13 = scmp.ne.s32.totalorder %s2337_s21, %s1499_s8  ;;  %p1504_p12 = scmp.lt.u32.totalorder %s2337_s21, %s2401_s5 }
 0x30e   : > { %p1505_p4 = scmp.lt.u32.totalorder %s1503_s17, %s1499_s8  ;;  %p1507_p10 = scmp.lt.u32.totalorder %s1499_s8, %s2337_s21 }
 0x30f   : > { %p1501_p11 = pnand %p1500_p13, %p2424_p2 }
 0x310   : > { %p1506_p7 = por %p1505_p4, %p1504_p12 }
 0x311   : > { %p1502_p3 = pneg %p1501_p11 }
 0x312   : > { %p1508_p8 = por %p1507_p10, %p1506_p7 }
 0x314   : > { %p1509_p0 = pnand %p1508_p8, %p1502_p3 }
 0x316   : > { %1512 = shalt.err (!%p1509_p0)
}
 0x317   : > { %s1584_s9 = smov 256   ;;  %s1585_s6 = smov 512  }
 0x318   : > { %s1586_s7 = smov 16  }
 0x319   : > { %1288 = dma.vmem_to_hbm [thread:$0]  (%p2424_p2), %s2341_s12, 4096, %s2337_s21, %s1029_s26, %s1584_s9, %s1585_s6, %s1586_s7  }
 0x31a PF: > { %s2425_s27 = sld [smem:[#allocation14_spill]]  ;;  %s1060_s11 = sand.u32 1, %s1555_s18  }
 0x31b   : > { %p2427_p1 = scmp.ge.s32.totalorder %s1575_s23, 2  ;;  %s1061_s24 = scalar_lea.sflag [#allocation5], %s1060_s11 }
 0x320   : > { %p2426_p5 = scmp.ne.s32.totalorder %s2425_s27, 0 }
 0x322   : > { %p1302_p6 = pnand %p2427_p1, %p2426_p5 }
 0x324   : > { %1550 = dma.done.wait (!%p1302_p6), %s1061_s24, 4096  }
 0x325   : > { %1552 = vsyncadd (!%p1302_p6), %s1061_s24, 4294963200  ;;  %s20_s23 = sadd.s32 1, %s1575_s23   ;;  %s2428_s18 = smov %s1559_s19 }
 0x326   : > { %p17_p9 = scmp.ge.s32.totalorder %s20_s23, 4   ;;  %s2429_s19 = smov %s1563_s20 }
 0x327   : > { %s2430_s20 = smov %s1776_s10  ;;  %s2431_s21 = smov %s1571_s22 }
 0x328   : > { %s2432_s22 = smov %s2434_s14  ;;  %19 = sbr.rel (!%p17_p9) target bundleno = 6 (0x6), region = 100 }
 0x32f   :  { %1066 = vsyncpa [#allocation4], 1 }
 0x330   :  { %1068 = vsyncpa [#allocation4 + $0x1], 1 }
 0x331   :  { %1069 = vsyncpa [#allocation7], 1 }
 0x332   :  { %1070 = vsyncpa [#allocation5], 1 }
 0x333   :  { %1072 = vsyncpa [#allocation5 + $0x1], 1 }

</bundles_post_ra>
